<compile_context>
chip_gen: v5e
topology: v5e:2x2
jax: 0.10.0
libtpu: 0.0.40
codegen_flags: <defaults>
</compile_context>

<pallas_src>
import jax
import jax.numpy as jnp
from jax.experimental import pallas as pl
from jax.experimental.pallas import tpu as pltpu

BN_EPS = 1e-5
_VMEM_LIMIT = 48 * 1024 * 1024   # <= ~48 MiB so the same tiling fits v7x (64 MiB VMEM)


def _round_up(x, m):
    return (x + m - 1) // m * m


def _cdiv(a, b):
    return -(-a // b)


def _make_conv_stats_kernel(tap_offsets, tile_m):
    """Pass 1: in-VMEM im2col conv (single matmul) + per-tile BN partial sums."""

    def kernel(xm_ref, xh_ref, w_ref, mask_ref, y_ref, s1_ref, s2_ref):
        # (C_in_p, TM + HALO) slab covering every shifted read of this tile.
        slab = jnp.concatenate([xm_ref[...], xh_ref[...]], axis=1)

        # In-VMEM im2col: 27 static lane shifts stacked along the K axis.
        cols = jnp.concatenate([slab[:, s:s + tile_m] for s in tap_offsets],
                               axis=0)                            # (27*C_in_p, TM)

        # Single MXU matmul, f32 accumulation.
        acc = jnp.dot(w_ref[...], cols,
                      preferred_element_type=jnp.float32)         # (C_out_p, TM)

        # Conv bias intentionally omitted: cancelled by BN mean subtraction.
        y_ref[...] = acc.astype(y_ref.dtype)

        # Per-step BN partial sums over *interior* columns only (mask zeroes
        # halo / padding columns).  Written per grid step (no cross-step
        # carry) so the grid axis can be marked "parallel" (dual-TC on v7x).
        ym = acc * mask_ref[...]                                  # (C_out_p, TM)
        s1_ref[...] = jnp.sum(ym, axis=1, keepdims=True)[None]    # (1, C_out_p, 1)
        s2_ref[...] = jnp.sum(ym * acc, axis=1, keepdims=True)[None]

    return kernel


def _bn_relu_kernel(y_ref, scale_ref, shift_ref, o_ref):
    # Folded BatchNorm (single FMA) + ReLU on lane-dense (C, TM) tiles.
    y = y_ref[...].astype(jnp.float32)
    o_ref[...] = jnp.maximum(y * scale_ref[...] + shift_ref[...], 0.0)


def basic_layer_forward(x, w, b, gamma, beta, *, tile_m=2048,
                        compute_dtype=jnp.bfloat16, y_dtype=jnp.bfloat16):
    """x: (N, C_in, D, H, W).  Returns (N, C_out, D, H, W).

    compute_dtype: dtype of the MXU operands (input + weights); accumulation
        and all BN / VPU math stay f32.
    y_dtype: dtype of the conv intermediate written to / read from HBM.
    Use jnp.float32 for both to match PyTorch f32 numerics; the bf16 defaults
    halve HBM traffic at ~1e-3 relative error.
    """
    N, C_in, D, H, W = x.shape
    C_out = w.shape[0]

    C_in_p = _round_up(C_in, 8)
    C_out_p = _round_up(C_out, 8)

    Dp, Hp, Wp = D + 2, H + 2, W + 2
    P, Q = Hp * Wp, Wp
    S = Dp * Hp * Wp
    G = P + Q + 1                         # max |column shift| of a 3x3x3 tap
    M = N * D * H * W                     # real (interior) output positions
    M2 = N * S                            # positions including the spatial halo

    HALO = _round_up(2 * G, 128)          # lane-aligned halo block width
    TM = _round_up(max(tile_m, HALO), HALO)   # main tile, multiple of HALO
    nsteps = _cdiv(M2, TM)
    M2p = nsteps * TM                     # padded output columns
    M2c = M2p + HALO                      # input columns incl. trailing halo
    halo_blocks = TM // HALO

    # --- channel-major + spatial halo pad + flatten: every 3x3x3 tap becomes
    #     a constant *lane* shift and every tile is lane-dense.
    x_cm = jnp.transpose(x, (1, 0, 2, 3, 4))                      # (C, N, D, H, W)
    x_cm = jnp.pad(x_cm, ((0, C_in_p - C_in), (0, 0), (1, 1), (1, 1), (1, 1)))
    x2 = x_cm.reshape(C_in_p, M2)
    x3 = jnp.pad(x2, ((0, 0), (G, M2c - M2 - G))).astype(compute_dtype)

    # PyTorch conv weight (C_out, C_in, 3,3,3) -> (C_out_p, 27*C_in_p) with the
    # K axis ordered (kd, kh, kw, ci) to match the im2col stack in the kernel.
    w_r = jnp.transpose(w, (2, 3, 4, 1, 0))                       # (3,3,3,Ci,Co)
    w_r = jnp.pad(w_r, ((0, 0), (0, 0), (0, 0),
                        (0, C_in_p - C_in), (0, C_out_p - C_out)))
    Kp = 27 * C_in_p
    w2 = w_r.reshape(Kp, C_out_p).T.astype(compute_dtype)         # (C_out_p, Kp)
    # TODO(synk): tile the K axis (extra grid dim + f32 accumulator) once the
    # (27*C_in_p, TM) im2col slab no longer fits VMEM at production channels.

    # Conv bias `b` is not used by the kernels: training-mode BN subtracts the
    # per-channel batch mean, so a per-channel constant cancels exactly.
    # TODO(synk): re-add the bias if eval-mode (running-stats) BN is needed.
    del b

    tap_offsets = tuple(kd * P + kh * Q + kw
                        for kd in range(3) for kh in range(3) for kw in range(3))

    # 1.0 on columns that are real output positions, 0.0 on halo / padding.
    mask = jnp.zeros((N, Dp, Hp, Wp), jnp.float32)
    mask = mask.at[:, 1:D + 1, 1:H + 1, 1:W + 1].set(1.0)
    mask = jnp.pad(mask.reshape(1, M2), ((0, 0), (0, M2p - M2)))

    kernel1 = _make_conv_stats_kernel(tap_offsets, TM)
    in_bytes = jnp.dtype(compute_dtype).itemsize
    y_bytes = jnp.dtype(y_dtype).itemsize
    flops = 2 * M2p * Kp * C_out_p
    bytes_accessed = (nsteps * (TM + HALO) * C_in_p * in_bytes
                      + Kp * C_out_p * in_bytes + M2p * 4
                      + M2p * C_out_p * y_bytes + 2 * nsteps * C_out_p * 4)

    y2, s1p, s2p = pl.pallas_call(
        kernel1,
        out_shape=(jax.ShapeDtypeStruct((C_out_p, M2p), y_dtype),
                   jax.ShapeDtypeStruct((nsteps, C_out_p, 1), jnp.float32),
                   jax.ShapeDtypeStruct((nsteps, C_out_p, 1), jnp.float32)),
        grid=(nsteps,),
        in_specs=[
            pl.BlockSpec((C_in_p, TM), lambda i: (0, i)),                 # main cols
            pl.BlockSpec((C_in_p, HALO),
                         lambda i: (0, (i + 1) * halo_blocks)),           # halo cols
            pl.BlockSpec((C_out_p, Kp), lambda i: (0, 0)),                # weights
            pl.BlockSpec((1, TM), lambda i: (0, i)),                      # mask row
        ],
        out_specs=(
            pl.BlockSpec((C_out_p, TM), lambda i: (0, i)),                # conv y
            pl.BlockSpec((1, C_out_p, 1), lambda i: (i, 0, 0)),           # sum part.
            pl.BlockSpec((1, C_out_p, 1), lambda i: (i, 0, 0)),           # sumsq part.
        ),
        compiler_params=pltpu.CompilerParams(
            dimension_semantics=("parallel",),      # no carry -> dual-TC on v7x
            vmem_limit_bytes=_VMEM_LIMIT),
        cost_estimate=pl.CostEstimate(flops=flops, transcendentals=0,
                                      bytes_accessed=bytes_accessed),
    )(x3, x3, w2, mask)

    # --- fold BatchNorm (training mode, biased variance) into scale/shift ---
    ssum = jnp.sum(s1p, axis=0)[:, 0]                 # (C_out_p,)
    ssq = jnp.sum(s2p, axis=0)[:, 0]
    mean = ssum / M
    var = jnp.maximum(ssq / M - mean * mean, 0.0)
    gamma_p = jnp.pad(gamma.astype(jnp.float32), (0, C_out_p - C_out))
    beta_p = jnp.pad(beta.astype(jnp.float32), (0, C_out_p - C_out))
    scale = gamma_p * jax.lax.rsqrt(var + BN_EPS)
    shift = beta_p - mean * scale
    scale2 = scale.reshape(C_out_p, 1)
    shift2 = shift.reshape(C_out_p, 1)

    # --- pass 2: normalize + ReLU on lane-dense (C, TM) tiles, "parallel" ----
    out2 = pl.pallas_call(
        _bn_relu_kernel,
        out_shape=jax.ShapeDtypeStruct((C_out_p, M2p), jnp.float32),
        grid=(nsteps,),
        in_specs=[
            pl.BlockSpec((C_out_p, TM), lambda i: (0, i)),
            pl.BlockSpec((C_out_p, 1), lambda i: (0, 0)),
            pl.BlockSpec((C_out_p, 1), lambda i: (0, 0)),
        ],
        out_specs=pl.BlockSpec((C_out_p, TM), lambda i: (0, i)),
        compiler_params=pltpu.CompilerParams(
            dimension_semantics=("parallel",),
            vmem_limit_bytes=_VMEM_LIMIT),
    )(y2, scale2, shift2)

    # Drop halo/padding columns and padded channels, back to NCDHW.
    # TODO(synk): fold this crop + transpose into pass 2 (or keep a stack of
    # BasicLayers channel-major end to end) to save ~2 output-sized HBM passes.
    out = out2[:, :M2].reshape(C_out_p, N, Dp, Hp, Wp)
    out = out[:C_out, :, 1:D + 1, 1:H + 1, 1:W + 1]
    return jnp.transpose(out, (1, 0, 2, 3, 4)).astype(x.dtype)


def reference_forward(x, w, b, gamma, beta):
    """Pure-JAX reference: conv3d (pad=1) + bias + training-mode BN + ReLU."""
    y = jax.lax.conv_general_dilated(
        x, w, window_strides=(1, 1, 1), padding=[(1, 1)] * 3,
        dimension_numbers=("NCDHW", "OIDHW", "NCDHW"))
    y = y + b.reshape(1, -1, 1, 1, 1)
    mean = jnp.mean(y, axis=(0, 2, 3, 4), keepdims=True)
    var = jnp.mean((y - mean) ** 2, axis=(0, 2, 3, 4), keepdims=True)
    y = (y - mean) * jax.lax.rsqrt(var + BN_EPS)
    y = y * gamma.reshape(1, -1, 1, 1, 1) + beta.reshape(1, -1, 1, 1, 1)
    return jnp.maximum(y, 0.0)


if __name__ == "__main__":
    N, C_in, C_out, D, H, W = 2, 4, 8, 8, 8, 8

    key = jax.random.PRNGKey(0)
    kx, kw, kb, kg, kbe = jax.random.split(key, 5)

    x = jax.random.normal(kx, (N, C_in, D, H, W), dtype=jnp.float32)
    w = 0.1 * jax.random.normal(kw, (C_out, C_in, 3, 3, 3), dtype=jnp.float32)
    b = 0.1 * jax.random.normal(kb, (C_out,), dtype=jnp.float32)
    gamma = 1.0 + 0.1 * jax.random.normal(kg, (C_out,), dtype=jnp.float32)
    beta = 0.1 * jax.random.normal(kbe, (C_out,), dtype=jnp.float32)

    ref = jax.block_until_ready(reference_forward(x, w, b, gamma, beta))

    # Exact-precision path (f32 operands + f32 intermediate), small tiles so the
    # run exercises a multi-step grid, the separate halo block and the per-step
    # statistic partials.
    out_f32 = basic_layer_forward(x, w, b, gamma, beta, tile_m=512,
                                  compute_dtype=jnp.float32,
                                  y_dtype=jnp.float32)
    out_f32 = jax.block_until_ready(out_f32)
    assert out_f32.shape == (N, C_out, D, H, W)
    assert jnp.allclose(out_f32, ref, atol=1e-4, rtol=1e-4), \
        "f32 path mismatch vs JAX reference"

    # Default fast path: bf16 MXU operands + bf16 conv intermediate
    # (f32 accumulation / f32 BN statistics), large lane-dense tiles.
    out_fast = jax.block_until_ready(basic_layer_forward(x, w, b, gamma, beta))
    assert out_fast.shape == (N, C_out, D, H, W)
    assert jnp.allclose(out_fast, ref, atol=5e-2, rtol=5e-2), \
        "bf16 path mismatch vs JAX reference"

    print("KERNEL_OK")
</pallas_src>

<mosaic_0001>
module attributes {stable_mosaic.version = 11 : i64} {
  func.func @kernel(%arg0: i32, %arg1: memref<8x512xf32, #tpu.memory_space<vmem>>, %arg2: memref<8x256xf32, #tpu.memory_space<vmem>>, %arg3: memref<8x216xf32, #tpu.memory_space<vmem>>, %arg4: memref<1x512xf32, #tpu.memory_space<vmem>>, %arg5: memref<8x512xf32, #tpu.memory_space<vmem>>, %arg6: memref<1x8x1xf32, #tpu.memory_space<vmem>>, %arg7: memref<1x8x1xf32, #tpu.memory_space<vmem>>) attributes {dimension_semantics = [#tpu.dimension_semantics<parallel>], iteration_bounds = array<i64: 4>, scalar_prefetch = 0 : i64, scratch_operands = 0 : i64, tpu.core_type = #tpu.core_type<tc>, window_params = [{transform_indices = @transform_0, window_bounds = array<i64: 8, 512>}, {transform_indices = @transform_1, window_bounds = array<i64: 8, 256>}, {pipeline_mode = #tpu.pipeline_mode<synchronous>, transform_indices = @transform_2, window_bounds = array<i64: 8, 216>}, {transform_indices = @transform_3, window_bounds = array<i64: 1, 512>}, {transform_indices = @transform_4, window_bounds = array<i64: 8, 512>}, {transform_indices = @transform_5, window_bounds = array<i64: 1, 8, 1>}, {transform_indices = @transform_6, window_bounds = array<i64: 1, 8, 1>}]} {
    %c0 = arith.constant 0 : index
    %c0_0 = arith.constant 0 : index
    %0 = vector.load %arg1[%c0, %c0_0] : memref<8x512xf32, #tpu.memory_space<vmem>>, vector<8x512xf32>
    %c0_1 = arith.constant 0 : index
    %c0_2 = arith.constant 0 : index
    %1 = vector.load %arg2[%c0_1, %c0_2] : memref<8x256xf32, #tpu.memory_space<vmem>>, vector<8x256xf32>
    %2 = tpu.concatenate %0, %1 in 1 : vector<8x512xf32>, vector<8x256xf32> -> vector<8x768xf32>
    %3 = vector.extract_strided_slice %2 {offsets = [0, 0], sizes = [8, 512], strides = [1, 1]} : vector<8x768xf32> to vector<8x512xf32>
    %4 = vector.extract_strided_slice %2 {offsets = [0, 1], sizes = [8, 512], strides = [1, 1]} : vector<8x768xf32> to vector<8x512xf32>
    %5 = vector.extract_strided_slice %2 {offsets = [0, 2], sizes = [8, 512], strides = [1, 1]} : vector<8x768xf32> to vector<8x512xf32>
    %6 = vector.extract_strided_slice %2 {offsets = [0, 10], sizes = [8, 512], strides = [1, 1]} : vector<8x768xf32> to vector<8x512xf32>
    %7 = vector.extract_strided_slice %2 {offsets = [0, 11], sizes = [8, 512], strides = [1, 1]} : vector<8x768xf32> to vector<8x512xf32>
    %8 = vector.extract_strided_slice %2 {offsets = [0, 12], sizes = [8, 512], strides = [1, 1]} : vector<8x768xf32> to vector<8x512xf32>
    %9 = vector.extract_strided_slice %2 {offsets = [0, 20], sizes = [8, 512], strides = [1, 1]} : vector<8x768xf32> to vector<8x512xf32>
    %10 = vector.extract_strided_slice %2 {offsets = [0, 21], sizes = [8, 512], strides = [1, 1]} : vector<8x768xf32> to vector<8x512xf32>
    %11 = vector.extract_strided_slice %2 {offsets = [0, 22], sizes = [8, 512], strides = [1, 1]} : vector<8x768xf32> to vector<8x512xf32>
    %12 = vector.extract_strided_slice %2 {offsets = [0, 100], sizes = [8, 512], strides = [1, 1]} : vector<8x768xf32> to vector<8x512xf32>
    %13 = vector.extract_strided_slice %2 {offsets = [0, 101], sizes = [8, 512], strides = [1, 1]} : vector<8x768xf32> to vector<8x512xf32>
    %14 = vector.extract_strided_slice %2 {offsets = [0, 102], sizes = [8, 512], strides = [1, 1]} : vector<8x768xf32> to vector<8x512xf32>
    %15 = vector.extract_strided_slice %2 {offsets = [0, 110], sizes = [8, 512], strides = [1, 1]} : vector<8x768xf32> to vector<8x512xf32>
    %16 = vector.extract_strided_slice %2 {offsets = [0, 111], sizes = [8, 512], strides = [1, 1]} : vector<8x768xf32> to vector<8x512xf32>
    %17 = vector.extract_strided_slice %2 {offsets = [0, 112], sizes = [8, 512], strides = [1, 1]} : vector<8x768xf32> to vector<8x512xf32>
    %18 = vector.extract_strided_slice %2 {offsets = [0, 120], sizes = [8, 512], strides = [1, 1]} : vector<8x768xf32> to vector<8x512xf32>
    %19 = vector.extract_strided_slice %2 {offsets = [0, 121], sizes = [8, 512], strides = [1, 1]} : vector<8x768xf32> to vector<8x512xf32>
    %20 = vector.extract_strided_slice %2 {offsets = [0, 122], sizes = [8, 512], strides = [1, 1]} : vector<8x768xf32> to vector<8x512xf32>
    %21 = vector.extract_strided_slice %2 {offsets = [0, 200], sizes = [8, 512], strides = [1, 1]} : vector<8x768xf32> to vector<8x512xf32>
    %22 = vector.extract_strided_slice %2 {offsets = [0, 201], sizes = [8, 512], strides = [1, 1]} : vector<8x768xf32> to vector<8x512xf32>
    %23 = vector.extract_strided_slice %2 {offsets = [0, 202], sizes = [8, 512], strides = [1, 1]} : vector<8x768xf32> to vector<8x512xf32>
    %24 = vector.extract_strided_slice %2 {offsets = [0, 210], sizes = [8, 512], strides = [1, 1]} : vector<8x768xf32> to vector<8x512xf32>
    %25 = vector.extract_strided_slice %2 {offsets = [0, 211], sizes = [8, 512], strides = [1, 1]} : vector<8x768xf32> to vector<8x512xf32>
    %26 = vector.extract_strided_slice %2 {offsets = [0, 212], sizes = [8, 512], strides = [1, 1]} : vector<8x768xf32> to vector<8x512xf32>
    %27 = vector.extract_strided_slice %2 {offsets = [0, 220], sizes = [8, 512], strides = [1, 1]} : vector<8x768xf32> to vector<8x512xf32>
    %28 = vector.extract_strided_slice %2 {offsets = [0, 221], sizes = [8, 512], strides = [1, 1]} : vector<8x768xf32> to vector<8x512xf32>
    %29 = vector.extract_strided_slice %2 {offsets = [0, 222], sizes = [8, 512], strides = [1, 1]} : vector<8x768xf32> to vector<8x512xf32>
    %30 = tpu.concatenate %3, %4, %5, %6, %7, %8, %9, %10, %11, %12, %13, %14, %15, %16, %17, %18 in 0 : vector<8x512xf32>, vector<8x512xf32>, vector<8x512xf32>, vector<8x512xf32>, vector<8x512xf32>, vector<8x512xf32>, vector<8x512xf32>, vector<8x512xf32>, vector<8x512xf32>, vector<8x512xf32>, vector<8x512xf32>, vector<8x512xf32>, vector<8x512xf32>, vector<8x512xf32>, vector<8x512xf32>, vector<8x512xf32> -> vector<128x512xf32>
    %31 = tpu.concatenate %19, %20, %21, %22, %23, %24, %25, %26, %27, %28, %29 in 0 : vector<8x512xf32>, vector<8x512xf32>, vector<8x512xf32>, vector<8x512xf32>, vector<8x512xf32>, vector<8x512xf32>, vector<8x512xf32>, vector<8x512xf32>, vector<8x512xf32>, vector<8x512xf32>, vector<8x512xf32> -> vector<88x512xf32>
    %32 = tpu.concatenate %30, %31 in 0 : vector<128x512xf32>, vector<88x512xf32> -> vector<216x512xf32>
    %c0_3 = arith.constant 0 : index
    %c0_4 = arith.constant 0 : index
    %33 = vector.load %arg3[%c0_3, %c0_4] : memref<8x216xf32, #tpu.memory_space<vmem>>, vector<8x216xf32>
    %cst = arith.constant dense<0.000000e+00> : vector<8x512xf32>
    %34 = tpu.matmul %33, %32, %cst {dimension_numbers = #tpu.dot_dimension_numbers<[1], [0], [0], [1], [0, 0, 1, 1], [], []>} : vector<8x216xf32>, vector<216x512xf32>, vector<8x512xf32> -> vector<8x512xf32>
    %c0_5 = arith.constant 0 : index
    %c0_6 = arith.constant 0 : index
    %35 = vector.load %arg5[%c0_5, %c0_6] : memref<8x512xf32, #tpu.memory_space<vmem>>, vector<8x512xf32>
    tpu.vector_store %arg5[%c0_5, %c0_6], %34 {strides = array<i32>} : memref<8x512xf32, #tpu.memory_space<vmem>>, vector<8x512xf32>,
    %c0_7 = arith.constant 0 : index
    %c0_8 = arith.constant 0 : index
    %36 = vector.load %arg4[%c0_7, %c0_8] : memref<1x512xf32, #tpu.memory_space<vmem>>, vector<1x512xf32>
    %37 = vector.broadcast %36 : vector<1x512xf32> to vector<8x512xf32>
    %38 = arith.mulf %34, %37 : vector<8x512xf32>
    %cst_9 = arith.constant dense<0.000000e+00> : vector<8xf32>
    %39 = vector.multi_reduction <add>, %38, %cst_9 [1] : vector<8x512xf32> to vector<8xf32>
    %40 = vector.shape_cast %39 : vector<8xf32> to vector<8x1xf32>
    %41 = vector.shape_cast %40 : vector<8x1xf32> to vector<1x8x1xf32>
    %c0_10 = arith.constant 0 : index
    %c0_11 = arith.constant 0 : index
    %c0_12 = arith.constant 0 : index
    %42 = vector.load %arg6[%c0_10, %c0_11, %c0_12] : memref<1x8x1xf32, #tpu.memory_space<vmem>>, vector<1x8x1xf32>
    tpu.vector_store %arg6[%c0_10, %c0_11, %c0_12], %41 {strides = array<i32>} : memref<1x8x1xf32, #tpu.memory_space<vmem>>, vector<1x8x1xf32>,
    %43 = arith.mulf %38, %34 : vector<8x512xf32>
    %cst_13 = arith.constant dense<0.000000e+00> : vector<8xf32>
    %44 = vector.multi_reduction <add>, %43, %cst_13 [1] : vector<8x512xf32> to vector<8xf32>
    %45 = vector.shape_cast %44 : vector<8xf32> to vector<8x1xf32>
    %46 = vector.shape_cast %45 : vector<8x1xf32> to vector<1x8x1xf32>
    %c0_14 = arith.constant 0 : index
    %c0_15 = arith.constant 0 : index
    %c0_16 = arith.constant 0 : index
    %47 = vector.load %arg7[%c0_14, %c0_15, %c0_16] : memref<1x8x1xf32, #tpu.memory_space<vmem>>, vector<1x8x1xf32>
    tpu.vector_store %arg7[%c0_14, %c0_15, %c0_16], %46 {strides = array<i32>} : memref<1x8x1xf32, #tpu.memory_space<vmem>>, vector<1x8x1xf32>,
    return
  }
  func.func @transform_0(%arg0: i32) -> (i32, i32) {
    %c0_i32 = arith.constant 0 : i32
    %c0_i32_0 = arith.constant 0 : i32
    return %c0_i32, %arg0 : i32, i32
  }
  func.func @transform_1(%arg0: i32) -> (i32, i32) {
    %c1_i32 = arith.constant 1 : i32
    %0 = arith.addi %arg0, %c1_i32 : i32
    %c2_i32 = arith.constant 2 : i32
    %1 = arith.muli %0, %c2_i32 : i32
    %c0_i32 = arith.constant 0 : i32
    %c0_i32_0 = arith.constant 0 : i32
    return %c0_i32, %1 : i32, i32
  }
  func.func @transform_2(%arg0: i32) -> (i32, i32) {
    %c0_i32 = arith.constant 0 : i32
    %c0_i32_0 = arith.constant 0 : i32
    %c0_i32_1 = arith.constant 0 : i32
    return %c0_i32, %c0_i32_0 : i32, i32
  }
  func.func @transform_3(%arg0: i32) -> (i32, i32) {
    %c0_i32 = arith.constant 0 : i32
    %c0_i32_0 = arith.constant 0 : i32
    return %c0_i32, %arg0 : i32, i32
  }
  func.func @transform_4(%arg0: i32) -> (i32, i32) {
    %c0_i32 = arith.constant 0 : i32
    %c0_i32_0 = arith.constant 0 : i32
    return %c0_i32, %arg0 : i32, i32
  }
  func.func @transform_5(%arg0: i32) -> (i32, i32, i32) {
    %c0_i32 = arith.constant 0 : i32
    %c0_i32_0 = arith.constant 0 : i32
    %c0_i32_1 = arith.constant 0 : i32
    return %arg0, %c0_i32, %c0_i32_0 : i32, i32, i32
  }
  func.func @transform_6(%arg0: i32) -> (i32, i32, i32) {
    %c0_i32 = arith.constant 0 : i32
    %c0_i32_0 = arith.constant 0 : i32
    %c0_i32_1 = arith.constant 0 : i32
    return %arg0, %c0_i32, %c0_i32_0 : i32, i32, i32
  }
}

</mosaic_0001>

<bundles_post_ra>
// kernel: tpu_custom_call.1
= control target key start
LH: loop header
LB: loop body
LE: loop exit
PB: predicated region body
PF: predicated region fallthrough
CT: control target
= control target key end

     0   :  { %s3324_s0 = inlined_call_operand.hbm [shape: f32[8,2304], index: 0, kind: input, shape index: {}]   ;;  %s3325_s1 = inlined_call_operand.hbm [shape: f32[8,2304], index: 1, kind: input, shape index: {}]   ;;  %s3326_s2 = inlined_call_operand.hbm [shape: f32[8,216], index: 2, kind: input, shape index: {}]   ;;  %s3327_s3 = inlined_call_operand.hbm [shape: f32[1,2048], index: 3, kind: input, shape index: {}]   ;;  %s3328_s4 = inlined_call_operand.hbm [shape: f32[8,2048], index: 4, kind: output, shape index: {0}]   ;;  %s3329_s5 = inlined_call_operand.vmem [shape: f32[4,8,1], index: 5, kind: output, shape index: {1}]   ;;  %s3330_s6 = inlined_call_operand.vmem [shape: f32[4,8,1], index: 6, kind: output, shape index: {2}]  }
   0x1   :  { %3369 = sst [smem:[#allocation44_spill]] %s3326_s2 }
   0x2   :  { %3370 = sst [smem:[#allocation45_spill]] %s3328_s4 }
   0x3   :  { %3371 = sst [smem:[#allocation46_spill]] %s3329_s5 }
   0x4   :  { %3372 = sst [smem:[#allocation47_spill]] %s3330_s6 }
   0x5   :  { %12 = vsyncpa [#allocation3], 0 }
   0x6   :  { %14 = vsyncpa [#allocation3 + $0x1], 0 }
   0x7   :  { %15 = vsyncpa [#allocation6], 0 }
   0x8   :  { %17 = vsyncpa [#allocation6 + $0x1], 0 }
   0x9   :  { %18 = vsyncpa [#allocation9], 0 }
   0xa   :  { %20 = vsyncpa [#allocation9 + $0x1], 0 }
   0xb   :  { %21 = vsyncpa [#allocation4], 0 }
   0xc   :  { %23 = vsyncpa [#allocation4 + $0x1], 0  ;;  %s2221_s21 = smov 0   ;;  %s2223_s22 = smov 0  }
   0xd   :  { %s2225_s23 = smov 0   ;;  %s2227_s24 = smov 0  }
   0xe   :  { %s2229_s25 = smov 0   ;;  %s2231_s26 = smov 0  }
   0xf   :  { %s2233_s27 = smov 0  }
  0x10 LB: > { %3373 = sst [smem:[#allocation16_spill]] %s2147_s24  ;;  %s2255_s28 = sadd.s32 4294967295, %s2159_s27   ;;  %s2159_s27 = sphi %s2233_s27, %s3465_s27   ;;  %s2155_s26 = sphi %s2231_s26, %s3473_s26   ;;  %s2151_s25 = sphi %s2229_s25, %s3472_s25   ;;  %s2147_s24 = sphi %s2227_s24, %s3471_s24   ;;  %s2143_s23 = sphi %s2225_s23, %s3470_s23   ;;  %s2139_s22 = sphi %s2223_s22, %s3469_s22   ;;  %s2135_s21 = sphi %s2221_s21, %s3468_s21  }
  0x11   : > { %s1420_s29 = sadd.s32 4294967294, %s2159_s27   ;;  %s2259_s30 = sadd.s32 1, %s2159_s27  }
  0x12   : > { %3374 = sst [smem:[#allocation17_spill]] %s2259_s30  ;;  %s36_s7 = sadd.s32 1, %s2155_s26 }
  0x13   : > { %s33_s8 = ssub.s32 %s2159_s27, %s2259_s30  ;;  %p43_p0 = scmp.ne.s32.totalorder %s2155_s26, %s2151_s25 }
  0x14   : > { %p34_p1 = scmp.eq.s32.totalorder %s33_s8, 0  ;;  %p44_p2 = scmp.eq.s32.totalorder %s2159_s27, 0 }
  0x15   : > { %p49_p3 = scmp.ne.s32.totalorder %s2151_s25, %s2147_s24  ;;  %p3338_p4 = scmp.eq.s32.totalorder %s2255_s28, 0 }
  0x16   : > { %s2271_s9 = scalar_select %p34_p1, %s2155_s26, %s36_s7  }
  0x17   : > { %p2278_p5 = por %p44_p2, %p43_p0  ;;  %p2287_p6 = por %p3338_p4, %p49_p3 }
  0x18   : > { %3375 = sst [smem:[#allocation18_spill]] %s2271_s9  ;;  %s1454_s12 = sshll.u32 %s2159_s27, 1 }
  0x19   : > { %s3377_s11 = scalar_select %p2287_p6, 1, 0 }
  0x1a   : > { %s66_s13 = sadd.s32 1, %s2143_s23  ;;  %s1455_s14 = sadd.s32 2, %s1454_s12 }
  0x1b   : > { %p73_p7 = scmp.ne.s32.totalorder %s2143_s23, %s2139_s22  ;;  %s1457_s15 = sadd.s32 2, %s1455_s14 }
  0x1c   : > { %p79_p8 = scmp.ne.s32.totalorder %s2139_s22, %s2135_s21  ;;  %s63_s16 = ssub.s32 %s1455_s14, %s1457_s15 }
  0x1d   : > { %p2298_p9 = por %p73_p7, %p44_p2  ;;  %p64_p10 = scmp.eq.s32.totalorder %s63_s16, 0 }
  0x1e   : > { %p2304_p11 = por %p79_p8, %p3338_p4  ;;  %p150_p12 = scmp.eq.s32.totalorder %s2255_s28, 3 }
  0x1f   : > { %p156_p13 = scmp.eq.s32.totalorder %s1420_s29, 3  ;;  %p1423_p7 = scmp.ge.s32.totalorder %s2159_s27, 1 }
  0x20   : > { %s3379_s18 = scalar_select %p2304_p11, 1, 0 }
  0x21   : > { %s2310_s19 = scalar_select %p64_p10, %s2143_s23, %s66_s13  }
  0x22   : > { %p2315_p1 = por %p150_p12, %p43_p0  ;;  %p2322_p2 = por %p156_p13, %p49_p3 }
  0x23   : > { %3380 = sst [smem:[#allocation19_spill]] %s2310_s19  ;;  %p215_p6 = scmp.lt.s32.totalorder %s2159_s27, 5 }
  0x24   : > { %s3381_s20 = scalar_select %p2315_p1, 1, 0 }
  0x25   : > { %s3383_s21 = scalar_select %p2322_p2, 1, 0 }
  0x26   : > { %3382 = sst [smem:[#allocation20_spill]] %s3381_s20  ;;  %p2328_p8 = pnand %p1423_p7, %p215_p6 }
  0x27   : > { %3384 = sst [smem:[#allocation21_spill]] %s3383_s21  ;;  %s2161_s13 = smov [#allocation7]  }
  0x28   : > { %s3386_s2 = sld [smem:[#allocation44_spill]]  ;;  %p1473_p0 = pneg %p2328_p8 }
  0x29   : > { %s229_s14 = sshll.u32 %s2161_s13, 4  ;;  %p1425_p10 = scmp.ge.s32.totalorder %s2159_s27, 4  ;;  %s230_s14 = int_to_ptr.vmem [resolvable:$true] %s229_s14 }
  0x2a   : > { %p1474_p3 = pnand %p1473_p0, %p3338_p4 }
  0x2b   : > { %236 = sbr.rel (%p1425_p10) target bundleno = 116 (0x74), region = 20 }
  0x2e   : > { %s227_s12 = sshll.u32 %s3386_s2, 4  ;;  %s228_s12 = int_to_ptr.hbm [resolvable:$true] %s227_s12 }
  0x2f   : > { %1476 = dma.hbm_to_vmem [thread:$0]  (!%p1474_p3), %s228_s12, 256, %s230_s14, [#allocation6]  }
  0x30   : > { %239 = sbr.rel (!%p2278_p5) target bundleno = 84 (0x54), region = 24  ;;  %s240_s15 = sand.u32 (%p2278_p5), 1, %s2155_s26  }
  0x31   : > { %s1427_s16 = sshll.u32 (%p2278_p5), %s2159_s27, 2  ;;  %s1426_s8 = sshll.u32 (%p2278_p5), %s240_s15, 5 }
  0x32   : > { %s246_s29 = ssub.s32 (%p2278_p5), 18, %s1427_s16  ;;  %s2347_s12 = scalar_lea.sflag (%p2278_p5), [#allocation3], %s240_s15 }
  0x33   : > { %p247_p6 = scmp.lt.s32.totalorder (%p2278_p5), %s246_s29, 4  ;;  %s244_s14 = scalar_lea.vmem (%p2278_p5), [#allocation2], %s1426_s8 }
  0x35   : > { %s3475_s29 = smov (!%p247_p6, %s246_s29), 4 }
  0x36   : > { %s1428_s13 = sshll.u32 %s3475_s29, 3 }
  0x37   : > { %s250_s2 = ssub.s32 32, %s1428_s13 }
  0x38   : > { %s251_s9 = sshll.u32 %s250_s2, 4 }
  0x39   : > { %252 = vsyncadd %s2347_s12, %s251_s9  ;;  %p2350_p12 = scmp.ne.s32.totalorder %s1428_s13, 0  ;;  %s1458_s16 = sshll.u32 %s2159_s27, 5 }
  0x3a   : > { %s255_s24 = scalar_lea.hbm %s3324_s0, %s1458_s16  ;;  %s3339_s6 = sshll.u32 %s3475_s29, 7 }
  0x3b   : > { %s258_s2 = sshll.u32 %s255_s24, 4  ;;  %s2359_s15 = sshll.u32 %s244_s14, 4  ;;  %s259_s2 = int_to_ptr.hbm [resolvable:$true] %s258_s2  ;;  %s261_s15 = int_to_ptr.vmem [resolvable:$true] %s2359_s15 }
  0x3c   : > { %s1962_s9 = sshra.s32 %s259_s2, 4  ;;  %s1964_s8 = sshrl.u32 %s3339_s6, 4  ;;  %s1963_s9 = int_to_ptr.hbm [resolvable:$true] %s1962_s9 }
  0x3d   : > { %s1969_s13 = scalar_lea.hbm %s1963_s9, %s1964_s8  ;;  %s1973_s30 = scalar_lea.hbm %s3324_s0, 144 }
  0x3e   : > { %p1970_p13 = scmp.ne.s32.totalorder %s1963_s9, %s1969_s13  ;;  %p1974_p3 = scmp.lt.s32.totalorder %s1963_s9, %s3324_s0 }
  0x3f   : > { %p1975_p10 = scmp.lt.s32.totalorder %s1973_s30, %s1969_s13 }
  0x40   : > { %p1971_p7 = pnand %p1970_p13, %p2350_p12 }
  0x41   : > { %p1976_p6 = por %p1975_p10, %p1974_p3 }
  0x42   : > { %p1972_p0 = pneg %p1971_p7 }
  0x44   : > { %p1977_p4 = pnand %p1976_p6, %p1972_p0 }
  0x46   : > { %1980 = shalt.err (!%p1977_p4)
}
  0x47   : > { %s1981_s14 = sshra.s32 %s261_s15, 4  ;;  %s2162_s6 = smov [#allocation2]   ;;  %s1982_s14 = int_to_ptr.vmem [resolvable:$true] %s1981_s14 }
  0x48   : > { %s1988_s16 = scalar_lea.vmem %s1982_s14, %s1964_s8  ;;  %s1992_s4 = scalar_lea.vmem %s2162_s6, 64 }
  0x49   : > { %p1989_p2 = scmp.ne.s32.totalorder %s1982_s14, %s1988_s16  ;;  %p1994_p1 = scmp.lt.s32.totalorder %s1992_s4, %s1988_s16 }
  0x4b   : > { %p1990_p13 = pnand %p1989_p2, %p2350_p12 }
  0x4d   : > { %p1991_p7 = pneg %p1990_p13 }
  0x4f   : > { %p1996_p11 = pnand %p1994_p1, %p1991_p7 }
  0x51   : > { %1999 = shalt.err (!%p1996_p11)
}
  0x52   : > { %s3388_s5 = sshll.u32 %s3475_s29, 7 }
  0x53   : > { %263 = dma.hbm_to_vmem [thread:$0]  (%p2350_p12), %s259_s2, %s3388_s5, %s261_s15, %s2347_s12  }
  0x54 PF: > { %s267_s20 = sand.u32 1, %s2159_s27   ;;  %s269_s9 = sand.u32 1, %s2143_s23  }
  0x55   : > { %s1433_s8 = sshll.u32 %s269_s9, 4  ;;  %s1434_s13 = sshll.u32 %s2159_s27, 5 }
  0x56   : > { %s1299_s30 = scalar_lea.hbm %s3325_s1, %s1434_s13  ;;  %s271_s21 = scalar_lea.vmem [#allocation5], %s1433_s8 }
  0x57   : > { %s282_s19 = sshll.u32 %s271_s21, 4  ;;  %s1300_s24 = scalar_lea.hbm %s1299_s30, 32  ;;  %s283_s19 = int_to_ptr.vmem [resolvable:$true] %s282_s19 }
  0x58   : > { %s280_s29 = sshll.u32 %s1300_s24, 4  ;;  %s289_s12 = sand.u32 1, %s2155_s26   ;;  %s281_s29 = int_to_ptr.hbm [resolvable:$true] %s280_s29 }
  0x59   : > { %s268_s2 = scalar_lea.sflag [#allocation6], %s267_s20  ;;  %s2001_s15 = sshra.s32 %s281_s29, 4  ;;  %s2002_s15 = int_to_ptr.hbm [resolvable:$true] %s2001_s15 }
  0x5a   : > { %s2003_s14 = scalar_lea.hbm %s2002_s15, 16  ;;  %s2007_s9 = scalar_lea.hbm %s3325_s1, 144 }
  0x5b   : > { %p2004_p4 = scmp.ne.s32.totalorder %s2002_s15, %s2003_s14  ;;  %p2008_p2 = scmp.lt.s32.totalorder %s2002_s15, %s3325_s1 }
  0x5c   : > { %p2009_p12 = scmp.lt.s32.totalorder %s2007_s9, %s2003_s14 }
  0x5d   : > { %p2005_p11 = pnand %p2004_p4, %p2298_p9 }
  0x5e   : > { %p2010_p0 = por %p2009_p12, %p2008_p2 }
  0x5f   : > { %p2006_p1 = pneg %p2005_p11 }
  0x61   : > { %p2011_p3 = pnand %p2010_p0, %p2006_p1 }
  0x63   : > { %2014 = shalt.err (!%p2011_p3)
}
  0x64   : > { %1464 = dma.hbm_to_vmem [thread:$0]  (%p2298_p9), %s281_s29, 256, %s283_s19, %s268_s2  }
  0x65   : > { %s1435_s20 = sshll.u32 %s289_s12, 2  ;;  %s1436_s6 = sshll.u32 %s2159_s27, 2 }
  0x66   : > { %s297_s21 = scalar_lea.hbm %s3327_s3, %s1436_s6  ;;  %s293_s16 = scalar_lea.vmem [#allocation8], %s1435_s20 }
  0x67   : > { %s299_s24 = sshll.u32 %s297_s21, 4  ;;  %s301_s5 = sshll.u32 %s293_s16, 4  ;;  %s300_s24 = int_to_ptr.hbm [resolvable:$true] %s299_s24  ;;  %s302_s5 = int_to_ptr.vmem [resolvable:$true] %s301_s5 }
  0x68   : > { %s290_s15 = scalar_lea.sflag [#allocation9], %s289_s12  ;;  %s2029_s14 = sshra.s32 %s300_s24, 4  ;;  %s2030_s14 = int_to_ptr.hbm [resolvable:$true] %s2029_s14 }
  0x69   : > { %s2031_s9 = scalar_lea.hbm %s2030_s14, 4  ;;  %s2035_s29 = scalar_lea.hbm %s3327_s3, 16 }
  0x6a   : > { %p2032_p10 = scmp.ne.s32.totalorder %s2030_s14, %s2031_s9  ;;  %p2036_p9 = scmp.lt.s32.totalorder %s2030_s14, %s3327_s3 }
  0x6b   : > { %p2037_p7 = scmp.lt.s32.totalorder %s2035_s29, %s2031_s9 }
  0x6c   : > { %p2033_p6 = pnand %p2032_p10, %p2278_p5 }
  0x6d   : > { %p2038_p4 = por %p2037_p7, %p2036_p9 }
  0x6e   : > { %p2034_p13 = pneg %p2033_p6 }
  0x70   : > { %p2039_p11 = pnand %p2038_p4, %p2034_p13 }
  0x72   : > { %2042 = shalt.err (!%p2039_p11)
}
  0x73   : > { %1465 = dma.hbm_to_vmem [thread:$0]  (%p2278_p5), %s300_s24, 64, %s302_s5, %s290_s15  }
  0x74 PF: > { %310 = sbr.rel (%p2328_p8) target bundleno = 848 (0x350), region = 36 }
  0x79   : > { %s2413_s12 = sand.u32 1, %s2151_s25   ;;  %p3389_p1 = scmp.ne.s32.totalorder %s3377_s11, 0 }
  0x7a   : > { %s1438_s8 = sshll.u32 %s2413_s12, 5  ;;  %s313_s20 = scalar_lea.sflag [#allocation3], %s2413_s12 }
  0x7b   : > { %s2419_s6 = scalar_lea.vmem [#allocation2], %s1438_s8 }
  0x7c   : > { %2114 = dma.done.wait (%p3389_p1), %s313_s20, 512  }
  0x7d   : > { %2116 = vsyncadd (%p3389_p1), %s313_s20, 4294966784  ;;  %s322_s10 = sand.u32 1, %s2255_s28   ;;  %s324_s7 = sand.u32 1, %s2139_s22  }
  0x7e   : > { %s1439_s4 = sshll.u32 %s324_s7, 4  ;;  %s323_s30 = scalar_lea.sflag [#allocation6], %s322_s10 }
  0x7f   : > { %s2427_s21 = scalar_lea.vmem [#allocation5], %s1439_s4  ;;  %p3390_p5 = scmp.ne.s32.totalorder %s3379_s18, 0 }
  0x81   : > { %2118 = dma.done.wait (%p3390_p5), %s323_s30, 256  }
  0x82   : > { %2120 = vsyncadd (%p3390_p5), %s323_s30, 4294967040  ;;  %p3391_p8 = scmp.eq.s32.totalorder %s2255_s28, 0 }
  0x84   : > { %2122 = dma.done.wait (%p3391_p8), [#allocation6], 256   ;;  %p3392_p2 = pmov %p3391_p8 }
  0x85   : > { %s1441_s24 = sshll.u32 %s2413_s12, 2  ;;  %s338_s16 = scalar_lea.sflag [#allocation9], %s2413_s12 }
  0x86   : > { %2124 = vsyncadd (%p3392_p2), [#allocation6], 4294967040  ;;  %s2439_s5 = scalar_lea.vmem [#allocation8], %s1441_s24 }
  0x87   : > { %2126 = dma.done.wait (%p3389_p1), %s338_s16, 64  }
  0x88   : > { %2128 = vsyncadd (%p3389_p1), %s338_s16, 4294967232  ;;  %v2446_v0 = vld [vmem:[%s2427_s21] sm:$0xff]  ;;  %v2452_v2 = vld [vmem:[%s2419_s6 + $0x18] sm:$0xff]  ;;  %s2163_s18 = smov 127   ;;  %s2164_s11 = smov 126   ;;  %vm447_vm0 = vcmask 1031168  }
  0x89   : > { %v2449_v1 = vld [vmem:[%s2419_s6 + $0x10] sm:$0xff]  ;;  %3393 = vst [vmem:[#allocation22_spill] sm:$0xff] %v2452_v2  ;;  %426 = vrot.lane.b32.xlu1 %v2446_v0, %s2163_s18  ;;  %v2460_v4 = vld [vmem:[%s2419_s6] sm:$0xff]  ;;  %v2463_v5 = vld [vmem:[%s2419_s6 + $0x8] sm:$0xff]  ;;  %s2165_s15 = smov 118   ;;  %s2166_s14 = smov 117   ;;  %v2532_v20 = vpack.i.bf16 %v2446_v0, %v2452_v2 }
  0x8a   : > { %v2457_v3 = vpack.i.bf16 %v2452_v2, %v2449_v1  ;;  %v2467_v6 = vpack.i.bf16 %v2463_v5, %v2460_v4  ;;  %s2167_s9 = smov 116   ;;  %s2168_s17 = smov 108   ;;  %v2493_v7 = vld [vmem:[%s2427_s21 + $0x8] sm:$0xff]  ;;  %v2526_v18 = vpack.i.bf16 %v2449_v1, %v2463_v5  ;;  %vm3368_vm1 = vcmask 1039360  }
  0x8b   : > { %s2169_s19 = smov 107   ;;  %s2170_s29 = smov 106   ;;  %v1654_v8 = vpack.i.bf16 %v2493_v7, %v2446_v0  ;;  %vm466_vm2 = vcmask 965632   ;;  %vm485_vm3 = vcmask 957440   ;;  %vm504_vm4 = vcmask 949248  }
  0x8c   : > { %1580 = vrot.lane.b32.xlu2 %v2457_v3, %s2164_s11  ;;  %1565 = vrot.lane.b32.xlu0 %v2467_v6, %s2163_s18  ;;  %s2171_s2 = smov 28   ;;  %s2172_s13 = smov 27   ;;  %3397 = vst [vmem:[#allocation26_spill] sm:$0xff] %v2526_v18  ;;  %vm523_vm5 = vcmask 883712   ;;  %vm580_vm6 = vcmask 228352   ;;  %vm542_vm7 = vcmask 875520  }
  0x8d   : > { %s2173_s20 = smov 26   ;;  %s2174_s10 = smov 18   ;;  %vm599_vm8 = vcmask 220160   ;;  %vm561_vm9 = vcmask 867328   ;;  %vm618_vm10 = vcmask 211968   ;;  %vm637_vm11 = vcmask 146432  }
  0x8e   : > { %s2175_s7 = smov 17   ;;  %s2176_s4 = smov 16   ;;  %vm656_vm12 = vcmask 138240   ;;  %vm675_vm13 = vcmask 130048   ;;  %vm774_vm14 = vcmask 310272   ;;  %vm694_vm15 = vcmask 64512  }
  0x8f   : > { %s2177_s30 = smov 8   ;;  %s2178_s24 = smov 29  }
  0x90   : > { %s2179_s16 = smov 49  }
  0x91   : > { %1575 = vrot.lane.b32.xlu1 %v2467_v6, %s2164_s11 }
  0x94   : > { %445 = vrot.lane.b32.xlu2 %v2446_v0, %s2164_s11  ;;  %1570 = vrot.lane.b32.xlu0 %v2457_v3, %s2163_s18  ;;  %s2180_s18 = smov 37   ;;  %s2181_s11 = smov 38  }
  0x99   : > { %1590 = vrot.lane.b32.xlu1 %v2457_v3, %s2165_s15 }
  0x9c   : > { %464 = vrot.lane.b32.xlu2 %v2446_v0, %s2165_s15  ;;  %1585 = vrot.lane.b32.xlu0 %v2467_v6, %s2165_s15  ;;  %s2182_s15 = smov 39  }
  0xa1   : > { %1600 = vrot.lane.b32.xlu1 %v2457_v3, %s2166_s14 }
  0xa4   : > { %483 = vrot.lane.b32.xlu2 %v2446_v0, %s2166_s14  ;;  %1595 = vrot.lane.b32.xlu0 %v2467_v6, %s2166_s14  ;;  %s2183_s14 = smov 47  }
  0xa9   : > { %1610 = vrot.lane.b32.xlu1 %v2457_v3, %s2167_s9 }
  0xac   : > { %502 = vrot.lane.b32.xlu2 %v2446_v0, %s2167_s9  ;;  %1605 = vrot.lane.b32.xlu0 %v2467_v6, %s2167_s9  ;;  %s2184_s9 = smov 48  }
  0xb1   : > { %1620 = vrot.lane.b32.xlu1 %v2457_v3, %s2168_s17 }
  0xb4   : > { %521 = vrot.lane.b32.xlu2 %v2446_v0, %s2168_s17  ;;  %1615 = vrot.lane.b32.xlu0 %v2467_v6, %s2168_s17  ;;  %s2185_s17 = smov 7  }
  0xb9   : > { %1630 = vrot.lane.b32.xlu1 %v2457_v3, %s2169_s19 }
  0xbc   : > { %540 = vrot.lane.b32.xlu2 %v2446_v0, %s2169_s19  ;;  %1625 = vrot.lane.b32.xlu0 %v2467_v6, %s2169_s19 }
  0xc1   : > { %1640 = vrot.lane.b32.xlu1 %v2457_v3, %s2170_s29 }
  0xc4   : > { %559 = vrot.lane.b32.xlu2 %v2446_v0, %s2170_s29  ;;  %1635 = vrot.lane.b32.xlu0 %v2467_v6, %s2170_s29 }
  0xc9   : > { %1650 = vrot.lane.b32.xlu1 %v2457_v3, %s2171_s2 }
  0xcc   : > { %1655 = vrot.lane.b32.xlu2 %v1654_v8, %s2171_s2  ;;  %1645 = vrot.lane.b32.xlu0 %v2467_v6, %s2171_s2  ;;  %s3457_s2 = sld [smem:[#allocation45_spill]] }
  0xd1   : > { %1665 = vrot.lane.b32.xlu1 %v2457_v3, %s2172_s13 }
  0xd4   : > { %1670 = vrot.lane.b32.xlu2 %v1654_v8, %s2172_s13  ;;  %1660 = vrot.lane.b32.xlu0 %v2467_v6, %s2172_s13 }
  0xd9   : > { %1680 = vrot.lane.b32.xlu1 %v2457_v3, %s2173_s20 }
  0xdc   : > { %616 = vrot.lane.b32.xlu2 %v2446_v0, %s2173_s20  ;;  %1675 = vrot.lane.b32.xlu0 %v2467_v6, %s2173_s20 }
  0xe1   : > { %1690 = vrot.lane.b32.xlu1 %v2457_v3, %s2174_s10 }
  0xe4   : > { %635 = vrot.lane.b32.xlu2 %v2446_v0, %s2174_s10  ;;  %1685 = vrot.lane.b32.xlu0 %v2467_v6, %s2174_s10  ;;  %s3458_s10 = sld [smem:[#allocation20_spill]] }
  0xe6   : > { %v1581_v9 = vpop.permute.xlu2 %1580 }
  0xe7   : > { %v1583_v10 = vunpack.i.h.bf16 %v1581_v9  ;;  %v1582_v11 = vunpack.i.l.bf16 %v1581_v9 }
  0xe9   : > { %1700 = vrot.lane.b32.xlu1 %v2457_v3, %s2175_s7  ;;  %v2509_v12 = vsel %vm447_vm0, %v1582_v11, %v1583_v10 }
  0xea   : > { %3394 = vst [vmem:[#allocation23_spill] sm:$0xff] %v2509_v12  ;;  %p3459_p0 = scmp.ne.s32.totalorder %s3458_s10, 0 }
  0xec   : > { %654 = vrot.lane.b32.xlu2 %v2446_v0, %s2175_s7  ;;  %1695 = vrot.lane.b32.xlu0 %v2467_v6, %s2175_s7 }
  0xee   : > { %v446_v13 = vpop.permute.xlu2 %445 }
  0xef   : > { %v2514_v14 = vsel %vm447_vm0, %v1583_v10, %v446_v13 }
  0xf0   : > { %3395 = vst [vmem:[#allocation24_spill] sm:$0xff] %v2514_v14 }
  0xf1   : > { %1710 = vrot.lane.b32.xlu1 %v2457_v3, %s2176_s4 }
  0xf4   : > { %673 = vrot.lane.b32.xlu2 %v2446_v0, %s2176_s4  ;;  %1705 = vrot.lane.b32.xlu0 %v2467_v6, %s2176_s4 }
  0xf6   : > { %v465_v15 = vpop.permute.xlu2 %464 }
  0xf9   : > { %1720 = vrot.lane.b32.xlu1 %v2457_v3, %s2177_s30 }
  0xfb   : > { %v2520_v16 = vpop.permute.xlu1 %426 }
  0xfc   : > { %3396 = vst [vmem:[#allocation25_spill] sm:$0xff] %v2520_v16  ;;  %692 = vrot.lane.b32.xlu2 %v2446_v0, %s2177_s30  ;;  %1715 = vrot.lane.b32.xlu0 %v2467_v6, %s2177_s30 }
  0xfe   : > { %v484_v17 = vpop.permute.xlu2 %483  ;;  %v2528_v19 = vpop.permute.xlu0 %1565 }
  0xff   : > { %v3345_v26 = vunpack.i.h.bf16 %v2528_v19 }
 0x101   : > { %1730 = vrot.lane.b32.xlu1 %v2526_v18, %s2178_s24 }
 0x103   : > { %v2538_v21 = vpop.permute.xlu1 %1575 }
 0x104   : > { %1735 = vrot.lane.b32.xlu2 %v2532_v20, %s2178_s24  ;;  %v3346_v22 = vunpack.i.h.bf16 %v2538_v21  ;;  %1725 = vrot.lane.b32.xlu0 %v2526_v18, %s2179_s16 }
 0x106   : > { %v503_v23 = vpop.permute.xlu2 %502  ;;  %v2543_v24 = vpop.permute.xlu0 %1570  ;;  %v2548_v25 = vsel %vm447_vm0, %v3346_v22, %v1582_v11 }
 0x107   : > { %3398 = vst [vmem:[#allocation27_spill] sm:$0xff] %v2543_v24  ;;  %v3344_v27 = vunpack.i.h.bf16 %v2543_v24  ;;  %v3343_v28 = vunpack.i.l.bf16 %v2543_v24 }
 0x109   : > { %1745 = vrot.lane.b32.xlu1 %v2532_v20, %s2180_s18  ;;  %v2560_v29 = vsel %vm3368_vm1, %v3345_v26, %v3343_v28  ;;  %v2566_v30 = vsel %vm3368_vm1, %v3344_v27, %v2520_v16  ;;  %vm804_vm1 = vcmask 236544  }
 0x10a   : > { %3399 = vst [vmem:[#allocation28_spill] sm:$0xff] %v2566_v30 }
 0x10b   : > { %v1591_v31 = vpop.permute.xlu1 %1590 }
 0x10c   : > { %1750 = vrot.lane.b32.xlu2 %v2526_v18, %s2181_s11  ;;  %v1593_v32 = vunpack.i.h.bf16 %v1591_v31  ;;  %v1592_v33 = vunpack.i.l.bf16 %v1591_v31  ;;  %1740 = vrot.lane.b32.xlu0 %v2526_v18, %s2180_s18 }
 0x10e   : > { %v522_v34 = vpop.permute.xlu2 %521  ;;  %v2572_v35 = vpop.permute.xlu0 %1585  ;;  %v2575_v36 = vsel %vm466_vm2, %v1593_v32, %v465_v15  ;;  %v2578_v37 = vsel %vm466_vm2, %v1592_v33, %v1593_v32 }
 0x10f   : > { %3400 = vst [vmem:[#allocation29_spill] sm:$0xff] %v2575_v36  ;;  %v3347_v38 = vunpack.i.h.bf16 %v2572_v35 }
 0x110   : > { %3401 = vst [vmem:[#allocation30_spill] sm:$0xff] %v2578_v37 }
 0x111   : > { %1760 = vrot.lane.b32.xlu1 %v2526_v18, %s2182_s15  ;;  %v2586_v39 = vsel %vm466_vm2, %v3347_v38, %v1592_v33 }
 0x113   : > { %v1601_v40 = vpop.permute.xlu1 %1600 }
 0x114   : > { %1765 = vrot.lane.b32.xlu2 %v2532_v20, %s2182_s15  ;;  %v1603_v41 = vunpack.i.h.bf16 %v1601_v40  ;;  %v1602_v42 = vunpack.i.l.bf16 %v1601_v40  ;;  %1755 = vrot.lane.b32.xlu0 %v2532_v20, %s2181_s11 }
 0x116   : > { %v541_v43 = vpop.permute.xlu2 %540  ;;  %v2592_v44 = vpop.permute.xlu0 %1595  ;;  %v2595_v45 = vsel %vm485_vm3, %v1603_v41, %v484_v17  ;;  %v2598_v46 = vsel %vm485_vm3, %v1602_v42, %v1603_v41 }
 0x117   : > { %3402 = vst [vmem:[#allocation31_spill] sm:$0xff] %v2595_v45  ;;  %v3348_v47 = vunpack.i.h.bf16 %v2592_v44 }
 0x118   : > { %3403 = vst [vmem:[#allocation32_spill] sm:$0xff] %v2598_v46 }
 0x119   : > { %1775 = vrot.lane.b32.xlu1 %v2532_v20, %s2183_s14  ;;  %v2606_v48 = vsel %vm485_vm3, %v3348_v47, %v1602_v42 }
 0x11b   : > { %v1611_v49 = vpop.permute.xlu1 %1610 }
 0x11c   : > { %1780 = vrot.lane.b32.xlu2 %v2526_v18, %s2184_s9  ;;  %v1613_v50 = vunpack.i.h.bf16 %v1611_v49  ;;  %v1612_v51 = vunpack.i.l.bf16 %v1611_v49  ;;  %1770 = vrot.lane.b32.xlu0 %v2526_v18, %s2183_s14 }
 0x11e   : > { %v560_v52 = vpop.permute.xlu2 %559  ;;  %v2612_v53 = vpop.permute.xlu0 %1605  ;;  %v2615_v54 = vsel %vm504_vm4, %v1613_v50, %v503_v23  ;;  %v2618_v55 = vsel %vm504_vm4, %v1612_v51, %v1613_v50 }
 0x11f   : > { %3404 = vst [vmem:[#allocation33_spill] sm:$0xff] %v2615_v54  ;;  %v3349_v56 = vunpack.i.h.bf16 %v2612_v53 }
 0x120   : > { %3405 = vst [vmem:[#allocation34_spill] sm:$0xff] %v2618_v55 }
 0x121   : > { %802 = vrot.lane.b32.xlu1 %v2493_v7, %s2178_s24  ;;  %v2626_v57 = vsel %vm504_vm4, %v3349_v56, %v1612_v51 }
 0x123   : > { %v1621_v58 = vpop.permute.xlu1 %1620 }
 0x124   : > { %1790 = vrot.lane.b32.xlu2 %v2532_v20, %s2179_s16  ;;  %v1623_v59 = vunpack.i.h.bf16 %v1621_v58  ;;  %v1622_v60 = vunpack.i.l.bf16 %v1621_v58  ;;  %1785 = vrot.lane.b32.xlu0 %v2532_v20, %s2184_s9 }
 0x126   : > { %v1656_v61 = vpop.permute.xlu2 %1655  ;;  %v2632_v63 = vpop.permute.xlu0 %1615  ;;  %v2635_v0 = vsel %vm523_vm5, %v1623_v59, %v522_v34  ;;  %v2638_v1 = vsel %vm523_vm5, %v1622_v60, %v1623_v59 }
 0x127   : > { %v1658_v62 = vunpack.i.h.bf16 %v1656_v61  ;;  %3406 = vst [vmem:[#allocation35_spill] sm:$0xff] %v2638_v1  ;;  %v3350_v3 = vunpack.i.h.bf16 %v2632_v63  ;;  %v1657_v6 = vunpack.i.l.bf16 %v1656_v61 }
 0x129   : > { %772 = vrot.lane.b32.xlu1 %v2493_v7, %s2181_s11  ;;  %v2646_v8 = vsel %vm523_vm5, %v3350_v3, %v1622_v60  ;;  %v2649_v9 = vsel %vm580_vm6, %v1657_v6, %v1658_v62 }
 0x12b   : > { %v1631_v10 = vpop.permute.xlu1 %1630 }
 0x12c   : > { %757 = vrot.lane.b32.xlu2 %v2493_v7, %s2182_s15  ;;  %v1633_v11 = vunpack.i.h.bf16 %v1631_v10  ;;  %v1632_v13 = vunpack.i.l.bf16 %v1631_v10  ;;  %787 = vrot.lane.b32.xlu0 %v2493_v7, %s2180_s18 }
 0x12e   : > { %v1671_v15 = vpop.permute.xlu2 %1670  ;;  %v2655_v23 = vpop.permute.xlu0 %1625  ;;  %v2658_v31 = vsel %vm542_vm7, %v1633_v11, %v541_v43  ;;  %v2661_v32 = vsel %vm542_vm7, %v1632_v13, %v1633_v11 }
 0x12f   : > { %v1673_v17 = vunpack.i.h.bf16 %v1671_v15  ;;  %v1672_v20 = vunpack.i.l.bf16 %v1671_v15  ;;  %3407 = vst [vmem:[#allocation36_spill] sm:$0xff] %v2661_v32  ;;  %v3351_v33 = vunpack.i.h.bf16 %v2655_v23 }
 0x131   : > { %v2665_v34 = vsel %vm599_vm8, %v1672_v20, %v1673_v17  ;;  %727 = vrot.lane.b32.xlu1 %v2493_v7, %s2184_s9  ;;  %v2672_v40 = vsel %vm542_vm7, %v3351_v33, %v1632_v13 }
 0x133   : > { %v1641_v41 = vpop.permute.xlu1 %1640 }
 0x134   : > { %712 = vrot.lane.b32.xlu2 %v2493_v7, %s2179_s16  ;;  %v1643_v42 = vunpack.i.h.bf16 %v1641_v41  ;;  %v1642_v43 = vunpack.i.l.bf16 %v1641_v41  ;;  %742 = vrot.lane.b32.xlu0 %v2493_v7, %s2183_s14  ;;  %s2077_s16 = scalar_lea.hbm %s3457_s2, 128 }
 0x136   : > { %v617_v49 = vpop.permute.xlu2 %616  ;;  %v2678_v50 = vpop.permute.xlu0 %1635  ;;  %v2681_v51 = vsel %vm561_vm9, %v1643_v42, %v560_v52  ;;  %v2684_v58 = vsel %vm561_vm9, %v1642_v43, %v1643_v42 }
 0x137   : > { %3408 = vst [vmem:[#allocation37_spill] sm:$0xff] %v2684_v58  ;;  %v3352_v59 = vunpack.i.h.bf16 %v2678_v50 }
 0x139   : > { %v2690_v60 = vsel %vm561_vm9, %v3352_v59, %v1642_v43 }
 0x13b   : > { %v1651_v61 = vpop.permute.xlu1 %1650 }
 0x13c   : > { %v1653_v62 = vunpack.i.h.bf16 %v1651_v61  ;;  %v1652_v10 = vunpack.i.l.bf16 %v1651_v61 }
 0x13e   : > { %v636_v7 = vpop.permute.xlu2 %635  ;;  %v2692_v11 = vpop.permute.xlu0 %1645  ;;  %v2695_v13 = vsel %vm580_vm6, %v1653_v62, %v1657_v6  ;;  %v2701_v15 = vsel %vm580_vm6, %v1652_v10, %v1653_v62 }
 0x13f   : > { %v2698_v52 = vunpack.i.h.bf16 %v2692_v11  ;;  %3409 = vst [vmem:[#allocation38_spill] sm:$0xff] %v2701_v15 }
 0x141   : > { %v2707_v41 = vsel %vm580_vm6, %v2698_v52, %v1652_v10 }
 0x142   : > { %v1799_v42 = vpack.i.bf16 %v2701_v15, %v2707_v41 }
 0x143   : > { %v1666_v43 = vpop.permute.xlu1 %1665 }
 0x144   : > { %v1668_v61 = vunpack.i.h.bf16 %v1666_v43  ;;  %v1667_v6 = vunpack.i.l.bf16 %v1666_v43  ;;  %1800 = vrot.lane.b32.xlu1 %v1799_v42, %s2185_s17 }
 0x146   : > { %v2712_v28 = vpop.permute.xlu2 %654  ;;  %v2714_v62 = vpop.permute.xlu0 %1660  ;;  %v2717_v27 = vsel %vm599_vm8, %v1668_v61, %v1672_v20  ;;  %v2723_v10 = vsel %vm599_vm8, %v1667_v6, %v1668_v61 }
 0x147   : > { %v2720_v17 = vunpack.i.h.bf16 %v2714_v62  ;;  %3410 = vst [vmem:[#allocation39_spill] sm:$0xff] %v2723_v10 }
 0x149   : > { %v2727_v26 = vsel %vm599_vm8, %v2720_v17, %v1667_v6 }
 0x14a   : > { %v1794_v42 = vpack.i.bf16 %v2723_v10, %v2727_v26 }
 0x14b   : > { %v2731_v43 = vpop.permute.xlu1 %1680 }
 0x14c   : > { %v1683_v22 = vunpack.i.h.bf16 %v2731_v43  ;;  %v3353_v20 = vunpack.i.l.bf16 %v2731_v43  ;;  %1795 = vrot.lane.b32.xlu0 %v1794_v42, %s2185_s17 }
 0x14e   : > { %v2736_v38 = vpop.permute.xlu2 %673  ;;  %v2738_v61 = vpop.permute.xlu0 %1675  ;;  %v2741_v47 = vsel %vm618_vm10, %v1683_v22, %v617_v49  ;;  %v2746_v6 = vsel %vm618_vm10, %v3353_v20, %v1683_v22 }
 0x14f   : > { %3411 = vst [vmem:[#allocation40_spill] sm:$0xff] %v2746_v6 }
 0x153   : > { %v2748_v56 = vpop.permute.xlu1 %1690 }
 0x154   : > { %v1693_v3 = vunpack.i.h.bf16 %v2748_v56  ;;  %v3354_v33 = vunpack.i.l.bf16 %v2748_v56 }
 0x156   : > { %v2752_v42 = vpop.permute.xlu2 %692  ;;  %v2754_v59 = vpop.permute.xlu0 %1685  ;;  %v2757_v12 = vsel %vm637_vm11, %v1693_v3, %v636_v7  ;;  %v2762_v49 = vsel %vm637_vm11, %v3354_v33, %v1693_v3 }
 0x157   : > { %3412 = vst [vmem:[#allocation41_spill] sm:$0xff] %v2762_v49  ;;  %v1688_v24 = vunpack.i.h.bf16 %v2754_v59  ;;  %v1687_v54 = vunpack.i.l.bf16 %v2754_v59 }
 0x15b   : > { %v2764_v22 = vpop.permute.xlu1 %1700 }
 0x15c   : > { %v3357_v20 = vunpack.i.h.bf16 %v2764_v22  ;;  %v1702_v37 = vunpack.i.l.bf16 %v2764_v22 }
 0x15e   : > { %v2768_v46 = vpop.permute.xlu2 %1735  ;;  %v1696_v55 = vpop.permute.xlu0 %1695  ;;  %v2773_v7 = vsel %vm656_vm12, %v1702_v37, %v3357_v20 }
 0x15f   : > { %3413 = vst [vmem:[#allocation42_spill] sm:$0xff] %v2773_v7  ;;  %v1697_v18 = vunpack.i.l.bf16 %v1696_v55  ;;  %v1737_v45 = vunpack.i.l.bf16 %v2768_v46 }
 0x163   : > { %v2775_v1 = vpop.permute.xlu1 %1710 }
 0x164   : > { %v3361_v3 = vunpack.i.h.bf16 %v2775_v1  ;;  %v1712_v33 = vunpack.i.l.bf16 %v2775_v1 }
 0x166   : > { %v2779_v32 = vpop.permute.xlu2 %1750  ;;  %v1706_v10 = vpop.permute.xlu0 %1705  ;;  %v2786_v20 = vsel %vm675_vm13, %v1712_v33, %v3361_v3 }
 0x167   : > { %v3363_v58 = vunpack.i.h.bf16 %v2779_v32  ;;  %v3362_v15 = vunpack.i.l.bf16 %v2779_v32  ;;  %3414 = vst [vmem:[#allocation43_spill] sm:$0xff] %v2786_v20  ;;  %v1708_v20 = vunpack.i.h.bf16 %v1706_v10  ;;  %v1707_v14 = vunpack.i.l.bf16 %v1706_v10 }
 0x169   : > { %v775_v6 = vsel %vm774_vm14, %v3362_v15, %v3363_v58  ;;  %v676_v10 = vsel %vm675_vm13, %v1707_v14, %v1708_v20 }
 0x16a   : > { %v1814_v49 = vpack.i.bf16 %v775_v6, %v2720_v17  ;;  %v1698_v6 = vunpack.i.h.bf16 %v1696_v55 }
 0x16b   : > { %v2794_v7 = vpop.permute.xlu1 %1720 }
 0x16c   : > { %1815 = vrot.lane.b32.xlu1 %v1814_v49, %s2185_s17  ;;  %v3367_v16 = vunpack.i.h.bf16 %v2794_v7  ;;  %v1722_v2 = vunpack.i.l.bf16 %v2794_v7  ;;  %v658_v59 = vsel %vm656_vm12, %v1698_v6, %v1702_v37 }
 0x16e   : > { %v1716_v30 = vpop.permute.xlu0 %1715  ;;  %v2802_v3 = vsel %vm694_vm15, %v1722_v2, %v3367_v16 }
 0x16f   : > { %v1718_v15 = vunpack.i.h.bf16 %v1716_v30  ;;  %v1717_v58 = vunpack.i.l.bf16 %v1716_v30  ;;  %v677_v30 = vsel %vm675_vm13, %v1708_v20, %v1712_v33  ;;  %v1662_v20 = vunpack.i.l.bf16 %v2714_v62 }
 0x171   : > { %v695_v36 = vsel %vm694_vm15, %v1717_v58, %v1718_v15  ;;  %v696_v49 = vsel %vm694_vm15, %v1718_v15, %v1722_v2  ;;  %v1678_v2 = vunpack.i.h.bf16 %v2738_v61  ;;  %v657_v15 = vsel %vm656_vm12, %v1697_v18, %v1698_v6 }
 0x172   : > { %1020 = vmatpush.msra.mxu0 %v695_v36  ;;  %1060 = vmatpush.msra.mxu2 %v696_v49  ;;  %v1677_v36 = vunpack.i.l.bf16 %v2738_v61  ;;  %v638_v61 = vsel %vm637_vm11, %v1687_v54, %v1688_v24  ;;  %v3415_v18 = vunpack.i.l.bf16 %v2748_v56  ;;  %v1637_v54 = vunpack.i.l.bf16 %v2678_v50 }
 0x173   : > { %v2809_v16 = vpop.permute.xlu1 %1730 }
 0x174   : > { %v1733_v55 = vunpack.i.h.bf16 %v2809_v16  ;;  %v1732_v58 = vunpack.i.l.bf16 %v2809_v16  ;;  %1021 = vmatpush.msra.mxu0 %v676_v10  ;;  %1061 = vmatpush.msra.mxu2 %v677_v30  ;;  %v639_v37 = vsel %vm637_vm11, %v1688_v24, %v3415_v18  ;;  %v1647_v10 = vunpack.i.l.bf16 %v2692_v11 }
 0x175   : > { %v619_v30 = vsel %vm618_vm10, %v1677_v36, %v1678_v2  ;;  %v600_v24 = vsel %vm599_vm8, %v1662_v20, %v2720_v17  ;;  %v1627_v11 = vunpack.i.l.bf16 %v2655_v23  ;;  %v2859_v20 = vpop.permute.xlu2 %1765  ;;  %v3423_v16 = vunpack.i.h.bf16 %v2779_v32 }
 0x176   : > { %v2819_v49 = vpop.permute.xlu0 %1725  ;;  %1022 = vmatpush.msra.mxu0 %v657_v15  ;;  %1062 = vmatpush.msra.mxu2 %v658_v59  ;;  %v805_v14 = vsel %vm804_vm1, %v1732_v58, %v1733_v55  ;;  %v806_v33 = vsel %vm804_vm1, %v1733_v55, %v1737_v45  ;;  %v3416_v15 = vunpack.i.l.bf16 %v2731_v43  ;;  %v581_v43 = vsel %vm580_vm6, %v1647_v10, %v2698_v52 }
 0x177   : > { %v1804_v6 = vpack.i.bf16 %v806_v33, %v805_v14  ;;  %v1607_v33 = vunpack.i.l.bf16 %v2612_v53  ;;  %vm759_vm6 = vcmask 318464  }
 0x178   : > { %1023 = vmatpush.msra.mxu0 %v638_v61  ;;  %1063 = vmatpush.msra.mxu2 %v639_v37  ;;  %v620_v59 = vsel %vm618_vm10, %v1678_v2, %v3416_v15  ;;  %vm789_vm10 = vcmask 302080   ;;  %v1617_v2 = vunpack.i.l.bf16 %v2632_v63 }
 0x179   : > { %1805 = vrot.lane.b32.xlu2 %v1804_v6, %s2185_s17  ;;  %v1597_v6 = vunpack.i.l.bf16 %v2592_v44 }
 0x17a   : > { %1024 = vmatpush.msra.mxu0 %v619_v30  ;;  %1064 = vmatpush.msra.mxu2 %v620_v59 }
 0x17b   : > { %v2839_v56 = vpop.permute.xlu1 %1745 }
 0x17c   : > { %1025 = vmatpush.msra.mxu0 %v600_v24  ;;  %1065 = vmatpush.msra.mxu2 %v2727_v26  ;;  %v1747_v62 = vunpack.i.l.bf16 %v2839_v56  ;;  %v3417_v26 = vunpack.i.h.bf16 %v2678_v50  ;;  %v1767_v50 = vunpack.i.l.bf16 %v2859_v20 }
 0x17e   : > { %v2848_v55 = vpop.permute.xlu0 %1740  ;;  %1026 = vmatpush.msra.mxu0 %v581_v43  ;;  %1066 = vmatpush.msra.mxu2 %v2707_v41  ;;  %v562_v14 = vsel %vm561_vm9, %v1637_v54, %v3417_v26  ;;  %v3418_v41 = vunpack.i.h.bf16 %v2655_v23  ;;  %v3419_v23 = vunpack.i.h.bf16 %v2632_v63  ;;  %v1587_v54 = vunpack.i.l.bf16 %v2572_v35 }
 0x17f   : > { %v1743_v17 = vunpack.i.h.bf16 %v2848_v55  ;;  %v1742_v36 = vunpack.i.l.bf16 %v2848_v55  ;;  %v3421_v55 = vunpack.i.h.bf16 %v2592_v44  ;;  %v1738_v26 = vunpack.i.h.bf16 %v2768_v46 }
 0x180   : > { %1027 = vmatpush.msra.mxu0 %v562_v14  ;;  %1067 = vmatpush.msra.mxu2 %v2690_v60  ;;  %v543_v61 = vsel %vm542_vm7, %v1627_v11, %v3418_v41  ;;  %v524_v30 = vsel %vm523_vm5, %v1617_v2, %v3419_v23  ;;  %v3422_v44 = vunpack.i.h.bf16 %v2572_v35  ;;  %v1567_v14 = vunpack.i.l.bf16 %v2528_v19 }
 0x181   : > { %v790_v18 = vsel %vm789_vm10, %v1742_v36, %v1743_v17  ;;  %v791_v37 = vsel %vm789_vm10, %v1743_v17, %v1747_v62  ;;  %v486_v2 = vsel %vm485_vm3, %v1597_v6, %v3421_v55  ;;  %v1577_v17 = vunpack.i.l.bf16 %v2538_v21 }
 0x182   : > { %1028 = vmatpush.msra.mxu0 %v543_v61  ;;  %1068 = vmatpush.msra.mxu2 %v2672_v40  ;;  %v1809_v60 = vpack.i.bf16 %v791_v37, %v790_v18  ;;  %v3420_v40 = vunpack.i.h.bf16 %v2612_v53  ;;  %v807_v35 = vsel %vm804_vm1, %v1737_v45, %v1738_v26  ;;  %v3424_v61 = vunpack.i.h.bf16 %v2538_v21  ;;  %v2934_v45 = vpop.permute.xlu2 %1780 }
 0x183   : > { %v2871_v10 = vpop.permute.xlu1 %1760  ;;  %vm744_vm3 = vcmask 384000   ;;  %v3429_v55 = vpack.i.bf16 %v2665_v34, %v2695_v13  ;;  %vm925_vm5 = vcmask 56320   ;;  %vm1016_vm7 = vcmask 719872  }
 0x184   : > { %v1763_v15 = vunpack.i.h.bf16 %v2871_v10  ;;  %v1762_v59 = vunpack.i.l.bf16 %v2871_v10  ;;  %1810 = vrot.lane.b32.xlu0 %v1809_v60, %s2185_s17  ;;  %1029 = vmatpush.msra.mxu0 %v524_v30  ;;  %v505_v24 = vsel %vm504_vm4, %v1607_v33, %v3420_v40  ;;  %v448_v18 = vsel %vm447_vm0, %v1577_v17, %v3424_v61 }
 0x185   : > { %1069 = vmatpush.msra.mxu2 %v2646_v8  ;;  %v1844_v60 = vpack.i.bf16 %v807_v35, %v1742_v36  ;;  %v1748_v30 = vunpack.i.h.bf16 %v2839_v56  ;;  %v1783_v40 = vunpack.i.h.bf16 %v2934_v45  ;;  %vm729_vm0 = vcmask 392192  }
 0x186   : > { %v2884_v11 = vpop.permute.xlu0 %1755  ;;  %1030 = vmatpush.msra.mxu0 %v505_v24  ;;  %v761_v63 = vsel %vm759_vm6, %v1763_v15, %v1767_v50  ;;  %v760_v8 = vsel %vm759_vm6, %v1762_v59, %v1763_v15  ;;  %v1782_v24 = vunpack.i.l.bf16 %v2934_v45  ;;  %v3431_v56 = vunpack.i.l.bf16 %v2779_v32 }
 0x187   : > { %v1757_v43 = vunpack.i.l.bf16 %v2884_v11  ;;  %1070 = vmatpush.msra.mxu2 %v2626_v57  ;;  %v1829_v53 = vpack.i.bf16 %v1732_v58, %v761_v63  ;;  %v467_v57 = vsel %vm466_vm2, %v1587_v54, %v3422_v44  ;;  %v1824_v33 = vpack.i.bf16 %v760_v8, %v2717_v27 }
 0x188   : > { %1031 = vmatpush.msra.mxu0 %v486_v2  ;;  %vm3426_vm2 = vcmask 1039360   ;;  %v730_v34 = vsel %vm729_vm0, %v1782_v24, %v1783_v40  ;;  %v1758_v17 = vunpack.i.h.bf16 %v2884_v11  ;;  %v1728_v44 = vunpack.i.h.bf16 %v2819_v49 }
 0x189   : > { %1071 = vmatpush.msra.mxu2 %v2606_v48  ;;  %1830 = vrot.lane.b32.xlu1 %v1829_v53, %s2185_s17  ;;  %v776_v58 = vsel %vm774_vm14, %v3423_v16, %v1757_v43  ;;  %vm3437_vm4 = vmmov %vm3426_vm2 }
 0x18a   : > { %1032 = vmatpush.msra.mxu0 %v467_v57  ;;  %v1819_v41 = vpack.i.bf16 %v2698_v52, %v776_v58  ;;  %v3425_v52 = vunpack.i.h.bf16 %v2528_v19  ;;  %v3427_v19 = vunpack.i.h.bf16 %v2794_v7  ;;  %v3428_v7 = vunpack.i.h.bf16 %v2775_v1 }
 0x18b   : > { %1072 = vmatpush.msra.mxu2 %v2586_v39  ;;  %v2915_v48 = vpop.permute.xlu1 %1775  ;;  %v792_v1 = vsel %vm789_vm10, %v1747_v62, %v1748_v30  ;;  %v1727_v57 = vunpack.i.l.bf16 %v2819_v49 }
 0x18c   : > { %1825 = vrot.lane.b32.xlu0 %v1824_v33, %s2185_s17  ;;  %1820 = vrot.lane.b32.xlu2 %v1819_v41, %s2185_s17  ;;  %v1777_v37 = vunpack.i.l.bf16 %v2915_v48  ;;  %v2932_v46 = vsel %vm3426_vm2, %v1567_v14, %v3425_v52  ;;  %v3439_v52 = vld [vmem:[#allocation26_spill] sm:$0xff] }
 0x18d   : > { %1033 = vmatpush.msra.mxu0 %v448_v18  ;;  %1073 = vmatpush.msra.mxu2 %v2548_v25  ;;  %v698_v25 = vsel %vm694_vm15, %v3427_v19, %v2752_v42  ;;  %v679_v42 = vsel %vm675_vm13, %v3428_v7, %v2736_v38  ;;  %v3438_v18 = vld [vmem:[#allocation29_spill] sm:$0xff] }
 0x18e   : > { %v2927_v39 = vpop.permute.xlu0 %1770 }
 0x18f   : > { %v1773_v21 = vunpack.i.h.bf16 %v2927_v39  ;;  %v1772_v6 = vunpack.i.l.bf16 %v2927_v39  ;;  %1034 = vmatpush.msra.mxu0 %v2932_v46  ;;  %1074 = vmatpush.msra.mxu2 %v2560_v29 }
 0x191   : > { %1035 = vmatpush.msra.mxu0 %v2460_v4  ;;  %1845 = vrot.lane.b32.xlu1 %v1844_v60, %s2185_s17  ;;  %v745_v36 = vsel %vm744_vm3, %v1772_v6, %v1773_v21  ;;  %v746_v23 = vsel %vm744_vm3, %v1773_v21, %v1777_v37  ;;  %v1778_v60 = vunpack.i.h.bf16 %v2915_v48  ;;  %v3440_v21 = vld [vmem:[#allocation24_spill] sm:$0xff] }
 0x192   : > { %v1839_v15 = vpack.i.bf16 %v746_v23, %v745_v36  ;;  %1075 = vmatpush.msra.mxu2 %v2463_v5  ;;  %v3430_v5 = vunpack.i.h.bf16 %v2764_v22  ;;  %v2980_v22 = vpop.permute.xlu2 %1790 }
 0x193   : > { %1140 = vmatpush.msrb.mxu0 %v698_v25  ;;  %v803_v54 = vpop.permute.xlu1 %802  ;;  %v3441_v25 = vld [vmem:[#allocation28_spill] sm:$0xff]  ;;  %v747_v39 = vsel %vm744_vm3, %v1777_v37, %v1778_v60 }
 0x194   : > { %v808_v63 = vsel %vm804_vm1, %v1738_v26, %v803_v54  ;;  %1840 = vrot.lane.b32.xlu0 %v1839_v15, %s2185_s17  ;;  %1835 = vrot.lane.b32.xlu2 %v3429_v55, %s2185_s17  ;;  %v660_v38 = vsel %vm656_vm12, %v3430_v5, %v2712_v28  ;;  %v1849_v26 = vpack.i.bf16 %v730_v34, %v2649_v9  ;;  %vm714_vm1 = vcmask 400384   ;;  %v3443_v34 = vld [vmem:[#allocation25_spill] sm:$0xff] }
 0x195   : > { %1141 = vmatpush.msrb.mxu0 %v679_v42  ;;  %v1859_v53 = vpack.i.bf16 %v808_v63, %v792_v1  ;;  %v777_v9 = vsel %vm774_vm14, %v1757_v43, %v1758_v17  ;;  %v715_v49 = vsel %vm714_vm1, %v1727_v57, %v1728_v44  ;;  %v3433_v43 = vld [vmem:[#allocation31_spill] sm:$0xff]  ;;  %v1793_v42 = vunpack.i.h.bf16 %v2980_v22 }
 0x196   : > { %v2973_v2 = vpop.permute.xlu0 %1785  ;;  %v1894_v54 = vpack.i.bf16 %v747_v39, %v1782_v24 }
 0x197   : > { %1142 = vmatpush.msrb.mxu0 %v660_v38  ;;  %v1787_v8 = vunpack.i.l.bf16 %v2973_v2 }
 0x199   : > { %1143 = vmatpush.msrb.mxu0 %v2757_v12  ;;  %1860 = vrot.lane.b32.xlu1 %v1859_v53, %s2185_s17  ;;  %v731_v28 = vsel %vm729_vm0, %v1783_v40, %v1787_v8  ;;  %v1792_v12 = vunpack.i.l.bf16 %v2980_v22 }
 0x19a   : > { %v1854_v62 = vpack.i.bf16 %v3431_v56, %v731_v28  ;;  %v758_v11 = vpop.permute.xlu2 %757  ;;  %v1930_v56 = vld [vmem:[%s2427_s21] sm:$0xff]  ;;  %s376_s21 = scalar_lea.vmem [#allocation10], %s1438_s8 }
 0x19b   : > { %1144 = vmatpush.msrb.mxu0 %v2741_v47  ;;  %v716_v16 = vsel %vm714_vm1, %v1728_v44, %v1792_v12  ;;  %v773_v14 = vpop.permute.xlu1 %772  ;;  %v717_v37 = vsel %vm714_vm1, %v1792_v12, %v1793_v42  ;;  %s1237_s8 = sshll.u32 %s376_s21, 4  ;;  %s1238_s8 = int_to_ptr.vmem [resolvable:$true] %s1237_s8 }
 0x19c   : > { %1855 = vrot.lane.b32.xlu0 %v1854_v62, %s2185_s17  ;;  %1850 = vrot.lane.b32.xlu2 %v1849_v26, %s2185_s17  ;;  %v1864_v58 = vpack.i.bf16 %v716_v16, %v715_v49  ;;  %v1909_v45 = vpack.i.bf16 %v717_v37, %v2932_v46 }
 0x19d   : > { %1145 = vmatpush.msrb.mxu0 %v2717_v27 }
 0x19e   : > { %v788_v47 = vpop.permute.xlu0 %787 }
 0x19f   : > { %1146 = vmatpush.msrb.mxu0 %v2695_v13  ;;  %v793_v32 = vsel %vm789_vm10, %v1748_v30, %v788_v47  ;;  %v1869_v13 = vpack.i.bf16 %v777_v9, %v1762_v59  ;;  %v3434_v59 = vld [vmem:[#allocation27_spill] sm:$0xff] }
 0x1a0   : > { %v1874_v27 = vpack.i.bf16 %v2560_v29, %v793_v32  ;;  %v3432_v29 = vld [vmem:[#allocation33_spill] sm:$0xff]  ;;  %v3435_v33 = vunpack.i.h.bf16 %v3434_v59 }
 0x1a1   : > { %1147 = vmatpush.msrb.mxu0 %v2681_v51  ;;  %v1768_v51 = vunpack.i.h.bf16 %v2859_v20 }
 0x1a2   : > { %1875 = vrot.lane.b32.xlu1 %v1874_v27, %s2185_s17  ;;  %v713_v7 = vpop.permute.xlu2 %712 }
 0x1a3   : > { %1148 = vmatpush.msrb.mxu0 %v2658_v31  ;;  %v778_v31 = vsel %vm774_vm14, %v1758_v17, %v773_v14  ;;  %v762_v10 = vsel %vm759_vm6, %v1767_v50, %v1768_v51  ;;  %v1788_v50 = vunpack.i.h.bf16 %v2973_v2  ;;  %v763_v36 = vsel %vm759_vm6, %v1768_v51, %v758_v11  ;;  %v728_v40 = vpop.permute.xlu1 %727 }
 0x1a4   : > { %1870 = vrot.lane.b32.xlu0 %v1869_v13, %s2185_s17  ;;  %1865 = vrot.lane.b32.xlu2 %v1864_v58, %s2185_s17  ;;  %v1884_v35 = vpack.i.bf16 %v778_v31, %v762_v10  ;;  %v1899_v15 = vpack.i.bf16 %v1727_v57, %v763_v36  ;;  %v718_v63 = vsel %vm714_vm1, %v1793_v42, %v713_v7 }
 0x1a5   : > { %1149 = vmatpush.msrb.mxu0 %v2635_v0  ;;  %v3436_v0 = vunpack.i.l.bf16 %v3434_v59  ;;  %v732_v23 = vsel %vm729_vm0, %v1787_v8, %v1788_v50  ;;  %v733_v48 = vsel %vm729_vm0, %v1788_v50, %v728_v40  ;;  %v1919_v55 = vpack.i.bf16 %v718_v63, %v3441_v25  ;;  %v1929_v8 = vld [vmem:[%s2419_s6 + $0x18] sm:$0xff] }
 0x1a6   : > { %v743_v61 = vpop.permute.xlu0 %742  ;;  %v1914_v5 = vpack.i.bf16 %v2460_v4, %v733_v48  ;;  %v1924_v22 = vpack.i.bf16 %v3443_v34, %v1929_v8 }
 0x1a7   : > { %1150 = vmatpush.msrb.mxu0 %v3432_v29  ;;  %v3023_v41 = vsel %vm3437_vm4, %v3436_v0, %v3435_v33  ;;  %v748_v19 = vsel %vm744_vm3, %v1778_v60, %v743_v61 }
 0x1a8   : > { %v1879_v20 = vpack.i.bf16 %v1772_v6, %v3023_v41  ;;  %v1904_v30 = vpack.i.bf16 %v748_v19, %v732_v23  ;;  %v3442_v6 = vld [vmem:[#allocation22_spill] sm:$0xff] }
 0x1a9   : > { %1151 = vmatpush.msrb.mxu0 %v3433_v43 }
 0x1aa   : > { %1890 = vrot.lane.b32.xlu1 %v3439_v52, %s2185_s17 }
 0x1ab   : > { %1152 = vmatpush.msrb.mxu0 %v3438_v18 }
 0x1ac   : > { %1885 = vrot.lane.b32.xlu0 %v1884_v35, %s2185_s17  ;;  %1880 = vrot.lane.b32.xlu2 %v1879_v20, %s2185_s17 }
 0x1ad   : > { %1153 = vmatpush.msrb.mxu0 %v3440_v21 }
 0x1af   : > { %1154 = vmatpush.msrb.mxu0 %v3441_v25 }
 0x1b1   : > { %1155 = vmatpush.msrb.mxu0 %v3442_v6 }
 0x1b2   : > { %1905 = vrot.lane.b32.xlu1 %v1904_v30, %s2185_s17 }
 0x1b4   : > { %1900 = vrot.lane.b32.xlu0 %v1899_v15, %s2185_s17  ;;  %1895 = vrot.lane.b32.xlu2 %v1894_v54, %s2185_s17 }
 0x1b6   : > { %v3057_v24 = vpop.permute.xlu1 %1800 }
 0x1b7   : > { %v1803_v1 = vunpack.i.h.bf16 %v3057_v24  ;;  %v1802_v2 = vunpack.i.l.bf16 %v3057_v24 }
 0x1b9   : > { %v963_v28 = vsel %vm925_vm5, %v1802_v2, %v1803_v1 }
 0x1ba   : > { %1920 = vrot.lane.b32.xlu1 %v1919_v55, %s2185_s17 }
 0x1bc   : > { %1915 = vrot.lane.b32.xlu0 %v1914_v5, %s2185_s17  ;;  %1910 = vrot.lane.b32.xlu2 %v1909_v45, %s2185_s17 }
 0x1be   : > { %v3061_v38 = vpop.permute.xlu0 %1795 }
 0x1bf   : > { %v1798_v53 = vunpack.i.h.bf16 %v3061_v38  ;;  %v1797_v4 = vunpack.i.l.bf16 %v3061_v38 }
 0x1c1   : > { %v967_v46 = vsel %vm925_vm5, %v1797_v4, %v1798_v53 }
 0x1c2   : > { %1085 = vmatpush.msra.mxu3 %v967_v46 }
 0x1c4   : > { %823 = vrot.lane.b32.xlu0 %v1930_v56, %s2185_s17  ;;  %1086 = vmatpush.msra.mxu3 %v963_v28 }
 0x1c5   : > { %1925 = vrot.lane.b32.xlu2 %v1924_v22, %s2185_s17 }
 0x1d3   : > { %v3078_v62 = vpop.permute.xlu2 %1805 }
 0x1d4   : > { %v1808_v17 = vunpack.i.h.bf16 %v3078_v62  ;;  %v1807_v26 = vunpack.i.l.bf16 %v3078_v62 }
 0x1d6   : > { %v959_v12 = vsel %vm925_vm5, %v1807_v26, %v1808_v17 }
 0x1d7   : > { %1087 = vmatpush.msra.mxu3 %v959_v12 }
 0x1de   : > { %v1816_v44 = vpop.permute.xlu1 %1815 }
 0x1df   : > { %v1817_v57 = vunpack.i.l.bf16 %v1816_v44  ;;  %v1818_v51 = vunpack.i.h.bf16 %v1816_v44 }
 0x1e1   : > { %v966_v47 = vsel %vm925_vm5, %v1817_v57, %v1797_v4 }
 0x1e2   : > { %1045 = vmatpush.msra.mxu1 %v966_v47 }
 0x1e6   : > { %v3086_v32 = vpop.permute.xlu2 %1820 }
 0x1e7   : > { %v1823_v9 = vunpack.i.h.bf16 %v3086_v32  ;;  %v1822_v49 = vunpack.i.l.bf16 %v3086_v32 }
 0x1e9   : > { %v962_v27 = vsel %vm925_vm5, %v1823_v9, %v1802_v2  ;;  %v951_v43 = vsel %vm925_vm5, %v1818_v51, %v1822_v49 }
 0x1ea   : > { %1046 = vmatpush.msra.mxu1 %v962_v27 }
 0x1ee   : > { %v3090_v16 = vpop.permute.xlu2 %1835 }
 0x1ef   : > { %v1838_v59 = vunpack.i.h.bf16 %v3090_v16  ;;  %v1837_v60 = vunpack.i.l.bf16 %v3090_v16 }
 0x1f6   : > { %v3092_v13 = vpop.permute.xlu0 %1810  ;;  %v3097_v29 = vpop.permute.xlu2 %1850 }
 0x1f7   : > { %v1813_v58 = vunpack.i.h.bf16 %v3092_v13  ;;  %v1812_v14 = vunpack.i.l.bf16 %v3092_v13  ;;  %v1852_v35 = vunpack.i.l.bf16 %v3097_v29  ;;  %v1853_v63 = vunpack.i.h.bf16 %v3097_v29 }
 0x1f9   : > { %v955_v31 = vsel %vm925_vm5, %v1812_v14, %v1813_v58  ;;  %v965_v25 = vsel %vm925_vm5, %v1837_v60, %v1852_v35 }
 0x1fa   : > { %1088 = vmatpush.msra.mxu3 %v955_v31 }
 0x1fb   : > { %v3102_v11 = vpop.permute.xlu1 %1830 }
 0x1fc   : > { %v1833_v10 = vunpack.i.h.bf16 %v3102_v11  ;;  %1089 = vmatpush.msra.mxu3 %v951_v43  ;;  %v1832_v61 = vunpack.i.l.bf16 %v3102_v11 }
 0x1fe   : > { %v3109_v33 = vpop.permute.xlu0 %1825  ;;  %v958_v0 = vsel %vm925_vm5, %v1833_v10, %v1807_v26  ;;  %v3123_v21 = vpop.permute.xlu2 %1865 }
 0x1ff   : > { %v1828_v18 = vunpack.i.h.bf16 %v3109_v33  ;;  %v1827_v52 = vunpack.i.l.bf16 %v3109_v33  ;;  %1047 = vmatpush.msra.mxu1 %v958_v0  ;;  %v1868_v55 = vunpack.i.h.bf16 %v3123_v21  ;;  %v1867_v5 = vunpack.i.l.bf16 %v3123_v21 }
 0x201   : > { %v947_v20 = vsel %vm925_vm5, %v1828_v18, %v1832_v61  ;;  %v969_v50 = vsel %vm925_vm5, %v1827_v52, %v1838_v59  ;;  %v935_v8 = vsel %vm925_vm5, %v1867_v5, %v1868_v55 }
 0x202   : > { %1090 = vmatpush.msra.mxu3 %v947_v20  ;;  %1165 = vmatpush.msrb.mxu2 %v969_v50  ;;  %v968_v50 = vsel %vm925_vm5, %v1798_v53, %v1827_v52 }
 0x203   : > { %v3125_v19 = vpop.permute.xlu1 %1845 }
 0x204   : > { %v1847_v36 = vunpack.i.l.bf16 %v3125_v19  ;;  %1166 = vmatpush.msrb.mxu2 %v965_v25  ;;  %v1848_v42 = vunpack.i.h.bf16 %v3125_v19  ;;  %v3194_v25 = vld [vmem:[#allocation7] sm:$0xff] }
 0x205   : > { %1076 = vmatmul.f32.vlgmr.msra.gmra.mxu2 %v3194_v25  ;;  %1036 = vmatmul.f32.vlgmr.msra.gmra.mxu0 %v3194_v25 }
 0x206   : > { %v3131_v23 = vpop.permute.xlu0 %1840  ;;  %v954_v30 = vsel %vm925_vm5, %v1847_v36, %v1812_v14  ;;  %v3142_v54 = vpop.permute.xlu2 %1880  ;;  %v3196_v36 = vld [vmem:[#allocation7 + $0x8] sm:$0xff]  ;;  %v960_v33 = vsel %vm925_vm5, %v1808_v17, %v1848_v42 }
 0x207   : > { %v1843_v39 = vunpack.i.h.bf16 %v3131_v23  ;;  %v1842_v6 = vunpack.i.l.bf16 %v3131_v23  ;;  %1048 = vmatpush.msra.mxu1 %v954_v30  ;;  %v1882_v22 = vunpack.i.l.bf16 %v3142_v54  ;;  %v1883_v57 = vunpack.i.h.bf16 %v3142_v54 }
 0x208   : > { %v964_v30 = vsel %vm925_vm5, %v1803_v1, %v1837_v60 }
 0x209   : > { %v943_v15 = vsel %vm925_vm5, %v1842_v6, %v1843_v39 }
 0x20a   : > { %1091 = vmatpush.msra.mxu3 %v943_v15 }
 0x20b   : > { %v3139_v7 = vpop.permute.xlu1 %1860 }
 0x20c   : > { %v1863_v40 = vunpack.i.h.bf16 %v3139_v7  ;;  %v1862_v28 = vunpack.i.l.bf16 %v3139_v7 }
 0x20d   : > { %1156 = vmatmul.f32.vlgmr.msrb.gmra.mxu0 %v3194_v25 }
 0x20e   : > { %v3146_v48 = vpop.permute.xlu0 %1855  ;;  %v961_v37 = vsel %vm925_vm5, %v1848_v42, %v1863_v40  ;;  %v3168_v12 = vpop.permute.xlu2 %1895  ;;  %v956_v24 = vsel %vm925_vm5, %v1813_v58, %v1862_v28 }
 0x20f   : > { %v1858_v45 = vunpack.i.h.bf16 %v3146_v48  ;;  %v1857_v2 = vunpack.i.l.bf16 %v3146_v48  ;;  %1167 = vmatpush.msrb.mxu2 %v961_v37  ;;  %v1897_v14 = vunpack.i.l.bf16 %v3168_v12  ;;  %v1898_v7 = vunpack.i.h.bf16 %v3168_v12  ;;  %v3446_v12 = vld [vmem:[#allocation41_spill] sm:$0xff] }
 0x211   : > { %v950_v4 = vsel %vm925_vm5, %v1858_v45, %v1818_v51  ;;  %v939_v46 = vsel %vm925_vm5, %v1853_v63, %v1857_v2  ;;  %v942_v51 = vsel %vm925_vm5, %v1883_v57, %v1842_v6  ;;  %v938_v59 = vsel %vm925_vm5, %v1897_v14, %v1853_v63  ;;  %v3448_v57 = vld [vmem:[#allocation39_spill] sm:$0xff] }
 0x212   : > { %1049 = vmatpush.msra.mxu1 %v950_v4  ;;  %1092 = vmatpush.msra.mxu3 %v939_v46  ;;  %v944_v37 = vsel %vm925_vm5, %v1843_v39, %v1898_v7  ;;  %v3452_v14 = vld [vmem:[#allocation35_spill] sm:$0xff] }
 0x214   : > { %1093 = vmatpush.msra.mxu3 %v935_v8  ;;  %v3162_v34 = vpop.permute.xlu1 %1875 }
 0x215   : > { %v1878_v56 = vunpack.i.h.bf16 %v3162_v34  ;;  %v1877_v26 = vunpack.i.l.bf16 %v3162_v34 }
 0x216   : > { %v1871_v44 = vpop.permute.xlu0 %1870  ;;  %v1911_v38 = vpop.permute.xlu2 %1910 }
 0x217   : > { %v1872_v47 = vunpack.i.l.bf16 %v1871_v44  ;;  %v931_v9 = vsel %vm925_vm5, %v1878_v56, %v1882_v22  ;;  %v957_v27 = vsel %vm925_vm5, %v1862_v28, %v1877_v26  ;;  %v1873_v35 = vunpack.i.h.bf16 %v1871_v44  ;;  %v3447_v44 = vld [vmem:[#allocation40_spill] sm:$0xff] }
 0x218   : > { %1094 = vmatpush.msra.mxu3 %v931_v9  ;;  %1168 = vmatpush.msrb.mxu2 %v957_v27  ;;  %v1912_v1 = vunpack.i.l.bf16 %v1911_v38  ;;  %v3450_v9 = vld [vmem:[#allocation37_spill] sm:$0xff]  ;;  %v3451_v27 = vld [vmem:[#allocation36_spill] sm:$0xff] }
 0x219   : > { %v946_v29 = vsel %vm925_vm5, %v1872_v47, %v1828_v18  ;;  %v952_v62 = vsel %vm925_vm5, %v1822_v49, %v1873_v35  ;;  %v1913_v49 = vunpack.i.h.bf16 %v1911_v38  ;;  %v3449_v47 = vld [vmem:[#allocation38_spill] sm:$0xff] }
 0x21a   : > { %1050 = vmatpush.msra.mxu1 %v946_v29  ;;  %v930_v40 = vsel %vm925_vm5, %v1912_v1, %v1878_v56  ;;  %v3444_v56 = vld [vmem:[#allocation43_spill] sm:$0xff]  ;;  %v3453_v29 = vld [vmem:[#allocation34_spill] sm:$0xff] }
 0x21b   : > { %v936_v23 = vsel %vm925_vm5, %v1868_v55, %v1913_v49 }
 0x21c   : > { %1051 = vmatpush.msra.mxu1 %v942_v51  ;;  %v3178_v31 = vpop.permute.xlu1 %1890  ;;  %v3454_v51 = vld [vmem:[#allocation32_spill] sm:$0xff] }
 0x21d   : > { %v1893_v43 = vunpack.i.h.bf16 %v3178_v31  ;;  %v1892_v10 = vunpack.i.l.bf16 %v3178_v31  ;;  %v3455_v31 = vld [vmem:[#allocation30_spill] sm:$0xff] }
 0x21e   : > { %v1886_v0 = vpop.permute.xlu0 %1885  ;;  %1052 = vmatpush.msra.mxu1 %v938_v59 }
 0x21f   : > { %v1888_v20 = vunpack.i.h.bf16 %v1886_v0  ;;  %v927_v18 = vsel %vm925_vm5, %v1892_v10, %v1893_v43  ;;  %v1887_v16 = vunpack.i.l.bf16 %v1886_v0 }
 0x220   : > { %1095 = vmatpush.msra.mxu3 %v927_v18 }
 0x221   : > { %v953_v19 = vsel %vm925_vm5, %v1873_v35, %v1888_v20  ;;  %1446 = vmatmul.msk.f32.vlgmr.msra.gmra.mxu3 %vm1016_vm7, %v3196_v36  ;;  %v948_v58 = vsel %vm925_vm5, %v1832_v61, %v1887_v16 }
 0x222   : > { %1125 = vmatpush.msrb.mxu3 %v968_v50  ;;  %1169 = vmatpush.msrb.mxu2 %v953_v19 }
 0x224   : > { %1126 = vmatpush.msrb.mxu3 %v964_v30  ;;  %v1906_v53 = vpop.permute.xlu1 %1905 }
 0x225   : > { %v1908_v60 = vunpack.i.h.bf16 %v1906_v53  ;;  %v1907_v42 = vunpack.i.l.bf16 %v1906_v53 }
 0x226   : > { %1127 = vmatpush.msrb.mxu3 %v960_v33  ;;  %v1901_v52 = vpop.permute.xlu0 %1900 }
 0x227   : > { %v1903_v6 = vunpack.i.h.bf16 %v1901_v52  ;;  %v1902_v15 = vunpack.i.l.bf16 %v1901_v52  ;;  %v945_v32 = vsel %vm925_vm5, %v1898_v7, %v1908_v60  ;;  %v940_v61 = vsel %vm925_vm5, %v1857_v2, %v1907_v42 }
 0x228   : > { %1128 = vmatpush.msrb.mxu3 %v956_v24 }
 0x229   : > { %v934_v17 = vsel %vm925_vm5, %v1903_v6, %v1867_v5  ;;  %v949_v13 = vsel %vm925_vm5, %v1887_v16, %v1902_v15  ;;  %v1926_v5 = vpop.permute.xlu2 %1925 }
 0x22a   : > { %1129 = vmatpush.msrb.mxu3 %v952_v62  ;;  %1053 = vmatpush.msra.mxu1 %v934_v17  ;;  %v1927_v34 = vunpack.i.l.bf16 %v1926_v5  ;;  %v1928_v2 = vunpack.i.h.bf16 %v1926_v5 }
 0x22b   : > { %1170 = vmatpush.msrb.mxu2 %v949_v13 }
 0x22c   : > { %1130 = vmatpush.msrb.mxu3 %v948_v58  ;;  %v1921_v63 = vpop.permute.xlu1 %1920  ;;  %1054 = vmatpush.msra.mxu1 %v930_v40  ;;  %v928_v55 = vsel %vm925_vm5, %v1893_v43, %v1927_v34  ;;  %v3456_v43 = vld [vmem:[#allocation23_spill] sm:$0xff] }
 0x22d   : > { %1171 = vmatpush.msrb.mxu2 %v945_v32  ;;  %v1922_v11 = vunpack.i.l.bf16 %v1921_v63  ;;  %v1923_v4 = vunpack.i.h.bf16 %v1921_v63 }
 0x22e   : > { %1131 = vmatpush.msrb.mxu3 %v944_v37  ;;  %v1916_v45 = vpop.permute.xlu0 %1915 }
 0x22f   : > { %v1918_v46 = vunpack.i.h.bf16 %v1916_v45  ;;  %v1917_v8 = vunpack.i.l.bf16 %v1916_v45  ;;  %v932_v48 = vsel %vm925_vm5, %v1882_v22, %v1922_v11  ;;  %v937_v21 = vsel %vm925_vm5, %v1913_v49, %v1923_v4 }
 0x230   : > { %1132 = vmatpush.msrb.mxu3 %v940_v61  ;;  %v933_v54 = vsel %vm925_vm5, %v1922_v11, %v1928_v2 }
 0x231   : > { %v926_v39 = vsel %vm925_vm5, %v1918_v46, %v1892_v10  ;;  %v941_v28 = vsel %vm925_vm5, %v1907_v42, %v1917_v8  ;;  %v1931_v10 = vld [vmem:[%s2419_s6 + $0x10] sm:$0xff]  ;;  %s1459_s6 = sshll.u32 %s2255_s28, 5 }
 0x232   : > { %1133 = vmatpush.msrb.mxu3 %v936_v23  ;;  %1055 = vmatpush.msra.mxu1 %v926_v39  ;;  %s1235_s13 = scalar_lea.hbm %s3457_s2, %s1459_s6 }
 0x233   : > { %1172 = vmatpush.msrb.mxu2 %v941_v28  ;;  %1445 = vmatmul.msk.f32.vlgmr.msra.gmra.mxu1 %vm1016_vm7, %v3196_v36  ;;  %s1239_s20 = sshll.u32 %s1235_s13, 4  ;;  %s1240_s20 = int_to_ptr.hbm [resolvable:$true] %s1239_s20 }
 0x234   : > { %1100 = vmatpush.msrb.mxu1 %v2802_v3  ;;  %1134 = vmatpush.msrb.mxu3 %v932_v48  ;;  %v3445_v3 = vld [vmem:[#allocation42_spill] sm:$0xff]  ;;  %s2071_s7 = sshra.s32 %s1240_s20, 4  ;;  %s2072_s7 = int_to_ptr.hbm [resolvable:$true] %s2071_s7 }
 0x235   : > { %1173 = vmatpush.msrb.mxu2 %v937_v21  ;;  %s2073_s4 = scalar_lea.hbm %s2072_s7, 32  ;;  %p2078_p6 = scmp.lt.s32.totalorder %s2072_s7, %s3457_s2 }
 0x236   : > { %1101 = vmatpush.msrb.mxu1 %v3444_v56  ;;  %1135 = vmatpush.msrb.mxu3 %v928_v55  ;;  %v824_v22 = vpop.permute.xlu0 %823  ;;  %p2074_p12 = scmp.ne.s32.totalorder %s2072_s7, %s2073_s4  ;;  %p2079_p13 = scmp.lt.s32.totalorder %s2077_s16, %s2073_s4 }
 0x237   : > { %1174 = vmatpush.msrb.mxu2 %v933_v54  ;;  %1447 = vmatmul.msk.f32.vlgmr.msrb.gmra.mxu3 %vm1016_vm7, %v3196_v36  ;;  %v929_v26 = vsel %vm925_vm5, %v1927_v34, %v824_v22 }
 0x238   : > { %1102 = vmatpush.msrb.mxu1 %v3445_v3  ;;  %p2075_p3 = pnand %p2074_p12, %p3459_p0  ;;  %p2080_p9 = por %p2079_p13, %p2078_p6 }
 0x239   : > { %1175 = vmatpush.msrb.mxu2 %v929_v26 }
 0x23a   : > { %1103 = vmatpush.msrb.mxu1 %v3446_v12  ;;  %1448 = vmatmul.msk.f32.vlgmr.msrb.gmra.mxu2 %vm1016_vm7, %v3196_v36  ;;  %p2076_p10 = pneg %p2075_p3 }
 0x23c   : > { %1104 = vmatpush.msrb.mxu1 %v3447_v44  ;;  %p2081_p7 = pnand %p2080_p9, %p2076_p10 }
 0x23e   : > { %1105 = vmatpush.msrb.mxu1 %v3448_v57 }
 0x240   : > { %1106 = vmatpush.msrb.mxu1 %v3449_v47 }
 0x242   : > { %1107 = vmatpush.msrb.mxu1 %v3450_v9 }
 0x244   : > { %1108 = vmatpush.msrb.mxu1 %v3451_v27 }
 0x246   : > { %1109 = vmatpush.msrb.mxu1 %v3452_v14 }
 0x248   : > { %1110 = vmatpush.msrb.mxu1 %v3453_v29 }
 0x24a   : > { %1111 = vmatpush.msrb.mxu1 %v3454_v51 }
 0x24c   : > { %1112 = vmatpush.msrb.mxu1 %v3455_v31 }
 0x24e   : > { %1113 = vmatpush.msrb.mxu1 %v3456_v43 }
 0x250   : > { %1114 = vmatpush.msrb.mxu1 %v3023_v41  ;;  %v1184_v41 = vld [vmem:[%s2439_s5] sm:$0xf]  ;;  %s1216_s5 = scalar_lea.sflag [#allocation4], %s2413_s12 }
 0x251   : > { %v1186_v38 = vperm.slane %v1184_v41, 0  ;;  %v1187_v53 = vperm.slane %v1184_v41, 1  ;;  %v1188_v52 = vperm.slane %v1184_v41, 2  ;;  %v1189_v24 = vperm.slane %v1184_v41, 3 }
 0x252   : > { %1115 = vmatpush.msrb.mxu1 %v1931_v10 }
 0x253   : > { %1116 = vmatmul.f32.vlgmr.msrb.gmra.mxu1 %v3194_v25 }
 0x282   : > { %v1037_v20 = vpop.f32.mrf.mxu0 }
 0x288   : > { %v1077_v0 = vpop.f32.mrf.mxu2 }
 0x28a   : > { %v1157_v19 = vpop.f32.mrf.mxu0 }
 0x2a4   : > { %v1097_v59 = vpop.f32.mrf.mxu3 }
 0x2a5   : > { %v1098_v35 = vadd.f32 %v1097_v59, %v1077_v0 }
 0x2a7   : > { %1181 = vst [vmem:[%s376_s21 + $0x8] sm:$0xff] %v1098_v35  ;;  %v1195_v33 = vmul.f32 %v1187_v53, %v1098_v35 }
 0x2a9   : > { %v1206_v6 = vmul.f32 %v1195_v33, %v1098_v35 }
 0x2b0   : > { %v1057_v18 = vpop.f32.mrf.mxu1 }
 0x2b1   : > { %v1058_v50 = vadd.f32 %v1057_v18, %v1037_v20 }
 0x2b3   : > { %1180 = vst [vmem:[%s376_s21] sm:$0xff] %v1058_v50  ;;  %v1194_v25 = vmul.f32 %v1186_v38, %v1058_v50 }
 0x2b5   : > { %v1205_v60 = vmul.f32 %v1194_v25, %v1058_v50  ;;  %v1198_v17 = vadd.f32 %v1195_v33, %v1194_v25 }
 0x2ba   : > { %v1137_v16 = vpop.f32.mrf.mxu3 }
 0x2bd   : > { %v1177_v36 = vpop.f32.mrf.mxu2 }
 0x2be   : > { %v1178_v30 = vadd.f32 %v1177_v36, %v1157_v19 }
 0x2c0   : > { %1183 = vst [vmem:[%s376_s21 + $0x18] sm:$0xff] %v1178_v30  ;;  %v1197_v62 = vmul.f32 %v1189_v24, %v1178_v30 }
 0x2d0   : > { %v1117_v1 = vpop.f32.mrf.mxu1 }
 0x2d1   : > { %v1138_v15 = vadd.f32 %v1137_v16, %v1117_v1 }
 0x2d3   : > { %1182 = vst [vmem:[%s376_s21 + $0x10] sm:$0xff] %v1138_v15  ;;  %v1196_v7 = vmul.f32 %v1188_v52, %v1138_v15 }
 0x2d4   : > { %2084 = shalt.err (!%p2081_p7)
}
 0x2d5   : > { %1471 = dma.vmem_to_hbm [thread:$0]  (%p3459_p0), %s1238_s8, 512, %s1240_s20, %s1216_s5   ;;  %v1207_v13 = vmul.f32 %v1196_v7, %v1138_v15  ;;  %v1199_v42 = vadd.f32 %v1198_v17, %v1196_v7  ;;  %v1209_v58 = vadd.f32 %v1206_v6, %v1205_v60  ;;  %v1208_v32 = vmul.f32 %v1197_v62, %v1178_v30 }
 0x2d6   : > { %p399_p4 = scmp.lt.s32.totalorder %s2255_s28, 3  ;;  %s3460_s9 = sld [smem:[#allocation46_spill]]  ;;  %vm1203_vm8 = vcmask 7168  }
 0x2d7   : > { %v1200_v40 = vadd.f32 %v1199_v42, %v1197_v62  ;;  %v1210_v49 = vadd.f32 %v1209_v58, %v1207_v13  ;;  %s3461_s19 = sld [smem:[#allocation47_spill]] }
 0x2d8   : > { %s3477_s28 = smov (!%p399_p4, %s2255_s28), 3 }
 0x2d9   : > { %1201 = vadd.xlane.f32.xlu1 %v1200_v40  ;;  %v1211_v63 = vadd.f32 %v1210_v49, %v1208_v32  ;;  %s1443_s12 = sshll.u32 %s3477_s28, 3 }
 0x2db   : > { %1212 = vadd.xlane.f32.xlu2 %v1211_v63 }
 0x2dc   : > { %s402_s17 = scalar_lea.vmem %s3460_s9, %s1443_s12 }
 0x2dd   : > { %s406_s29 = scalar_lea.vmem %s3461_s19, %s1443_s12 }
 0x34c   : > { %v1202_v37 = vpop.xlane.xlu1 %1201 }
 0x34d   : > { %1204 = vst.msk [vmem:[%s402_s17] sm:$0xff] %vm1203_vm8, %v1202_v37 }
 0x34e   : > { %v1213_v5 = vpop.xlane.xlu2 %1212 }
 0x34f   : > { %1214 = vst.msk [vmem:[%s406_s29] sm:$0xff] %vm1203_vm8, %v1213_v5 }
 0x350 PF: > { %s3462_s13 = sld [smem:[#allocation16_spill]]  ;;  %p1483_p11 = scmp.ge.s32.totalorder %s2159_s27, 2 }
 0x351   : > { %s3463_s8 = sld [smem:[#allocation21_spill]] }
 0x356   : > { %s1257_s20 = sand.u32 1, %s3462_s13  }
 0x357   : > { %p3464_p1 = scmp.ne.s32.totalorder %s3463_s8, 0  ;;  %s1258_s28 = scalar_lea.sflag [#allocation4], %s1257_s20 }
 0x359   : > { %p1478_p5 = pnand %p1483_p11, %p3464_p1 }
 0x35b   : > { %p1479_p8 = pneg %p1478_p5 }
 0x35d   : > { %2130 = dma.done.wait (%p1479_p8), %s1258_s28, 512  }
 0x35e   : > { %2132 = vsyncadd (%p1479_p8), %s1258_s28, 4294966784  ;;  %s3465_s27 = sld [smem:[#allocation17_spill]]  ;;  %s3468_s21 = smov %s2139_s22 }
 0x35f   : > { %s3466_s10 = sld [smem:[#allocation19_spill]]  ;;  %s3469_s22 = smov %s2143_s23 }
 0x360   : > { %s3467_s5 = sld [smem:[#allocation18_spill]]  ;;  %s3471_s24 = smov %s2151_s25 }
 0x361   : > { %s3472_s25 = smov %s2155_s26 }
 0x364   : > { %p26_p2 = scmp.ge.s32.totalorder %s3465_s27, 6  }
 0x365   : > { %s3470_s23 = smov %s3466_s10 }
 0x366   : > { %s3473_s26 = smov %s3467_s5  ;;  %28 = sbr.rel (!%p26_p2) target bundleno = 16 (0x10), region = 135 }
 0x36b   :  { %1278 = vsyncpa [#allocation3], 1 }
 0x36c   :  { %1280 = vsyncpa [#allocation3 + $0x1], 1 }
 0x36d   :  { %1281 = vsyncpa [#allocation6], 1 }
 0x36e   :  { %1283 = vsyncpa [#allocation6 + $0x1], 1 }
 0x36f   :  { %1284 = vsyncpa [#allocation9], 1 }
 0x370   :  { %1286 = vsyncpa [#allocation9 + $0x1], 1 }
 0x371   :  { %1287 = vsyncpa [#allocation4], 1 }
 0x372   :  { %1289 = vsyncpa [#allocation4 + $0x1], 1 }

</bundles_post_ra>
